<compile_context>
chip_gen: v6e
topology: v6e:2x2x1
jax: 0.10.0
libtpu: 0.0.40
codegen_flags: <defaults>
</compile_context>

<pallas_src>
from functools import partial

import numpy as np
import jax
import jax.numpy as jnp
from jax.experimental import pallas as pl
from jax.experimental.pallas import tpu as pltpu

# ---- module constants (NSF_CL defaults) -------------------------------------
K = 5                    # number of spline bins
TAIL = 4.0               # B (tail bound)
MIN_BW = 1e-3            # DEFAULT_MIN_BIN_WIDTH
MIN_BH = 1e-3            # DEFAULT_MIN_BIN_HEIGHT
MIN_D = 1e-3             # DEFAULT_MIN_DERIVATIVE
EPS = 1e-6               # searchsorted eps (implicit: inputs are clipped)

_DERIV_CONST = float(np.log(np.exp(1.0 - MIN_D) - 1.0))
_BOUNDARY_DERIV = float(MIN_D + np.log1p(np.exp(_DERIV_CONST)))   # == 1.0


def _round_up(a, m):
    return ((a + m - 1) // m) * m


# ---- small in-kernel helpers -------------------------------------------------
def _leaky_relu(x):
    return jnp.where(x > 0, x, 0.2 * x)


def _softplus(x):
    # numerically stable softplus
    return jnp.maximum(x, 0.0) + jnp.log(1.0 + jnp.exp(-jnp.abs(x)))


def _mlp_t(x, w1, w2, w3, w4, bpack):
    """Transposed MLP: x (nin, TB) f32; wi (out, in); biases packed in bpack.

    Bias pack layout (rows): b1 @ 0, b2 @ nhp, b3 @ 2*nhp, b4 @ 3*nhp
    where nhp = round_up(nh, 8).  Matmuls accumulate in f32; weights may be
    bf16 (v6e/v7x) in which case activations are cast per-dot.
    """
    nh = w1.shape[0]
    nhp = _round_up(nh, 8)
    cdt = w1.dtype
    b1 = bpack[0:nh, :]
    b2 = bpack[nhp:nhp + nh, :]
    b3 = bpack[2 * nhp:2 * nhp + nh, :]
    b4 = bpack[3 * nhp:, :]
    h = _leaky_relu(jnp.dot(w1, x.astype(cdt), preferred_element_type=jnp.float32) + b1)
    h = _leaky_relu(jnp.dot(w2, h.astype(cdt), preferred_element_type=jnp.float32) + b2)
    h = _leaky_relu(jnp.dot(w3, h.astype(cdt), preferred_element_type=jnp.float32) + b3)
    return jnp.dot(w4, h.astype(cdt), preferred_element_type=jnp.float32) + b4


def _spline_forward_t(params, x_in, dp):
    """unconstrained_RQS forward (inverse=False), fully fused & K-unrolled.

    params: (3K-1)*dp rows x TB cols; spline param p for feature j at row p*dp+j.
    x_in:   (dp, TB).
    Returns y, logabsdet (both (dp, TB)); rows j >= real d2 carry garbage that
    the caller masks / discards.
    """
    def col(p):
        return params[p * dp:(p + 1) * dp, :]

    two_b = 2.0 * TAIL

    # --- Wl = 2B*softmax(W_raw), Hl = 2B*softmax(H_raw) (max-shifted) --------
    def softmax_scaled(lst, scale):
        m = lst[0]
        for a in lst[1:]:
            m = jnp.maximum(m, a)
        e = [jnp.exp(a - m) for a in lst]
        s = e[0]
        for v in e[1:]:
            s = s + v
        inv = scale / s                     # divide stays on VPU (EUP is busy)
        return [v * inv for v in e]

    # --- bin fractions = MIN + (1-MIN*K)*softmax(.)
    #     (NO max shift: inputs are bounded in [0, 2B] = [0, 8]) --------------
    def bin_fractions(lst, min_frac):
        e = [jnp.exp(a) for a in lst]
        s = e[0]
        for v in e[1:]:
            s = s + v
        c = (1.0 - min_frac * K) / s
        return [min_frac + v * c for v in e]

    wf = bin_fractions(softmax_scaled([col(p) for p in range(K)], two_b), MIN_BW)
    hf = bin_fractions(softmax_scaled([col(K + p) for p in range(K)], two_b), MIN_BH)

    def deriv_at(knot):                     # interior knot index in 1..K-1
        # NSF_CL applies softplus to D, RQS applies MIN_D + softplus again
        return MIN_D + _softplus(_softplus(col(2 * K + knot - 1)))

    xin = jnp.clip(x_in, -TAIL, TAIL)

    # --- fused cumulative knots + searchsorted + gather -----------------------
    # bin index = max{ k : xin >= cumw[k] } (masks are nested, so the running
    # selects below reproduce searchsorted exactly; the +eps on the last knot
    # is irrelevant because xin is clipped to TAIL).
    accw, acch = wf[0], hf[0]
    cw = two_b * accw - TAIL                # cumw[1]
    ch = two_b * acch - TAIL                # cumh[1]
    dk = deriv_at(1)                        # derivative at knot 1
    in_w = cw + TAIL                        # bin-0 width  (cumw[0] = -TAIL)
    in_h = ch + TAIL                        # bin-0 height (cumh[0] = -TAIL)
    in_dp1 = dk                             # derivative at right knot of bin 0
    in_cumw = in_cumh = in_d = None         # bin-0 left-knot values are scalars

    for k in range(1, K):
        if k + 1 == K:                      # boundary overrides cumw[K]=cumh[K]=TAIL
            cw1 = TAIL
            ch1 = TAIL
            dk1 = _BOUNDARY_DERIV
        else:
            accw = accw + wf[k]
            acch = acch + hf[k]
            cw1 = two_b * accw - TAIL
            ch1 = two_b * acch - TAIL
            dk1 = deriv_at(k + 1)

        m = xin >= cw                       # bin index >= k
        # scalar boundary constants folded into the first select (no full_like)
        in_cumw = jnp.where(m, cw, -TAIL if k == 1 else in_cumw)
        in_cumh = jnp.where(m, ch, -TAIL if k == 1 else in_cumh)
        in_d = jnp.where(m, dk, _BOUNDARY_DERIV if k == 1 else in_d)
        in_w = jnp.where(m, cw1 - cw, in_w)
        in_h = jnp.where(m, ch1 - ch, in_h)
        in_dp1 = jnp.where(m, dk1, in_dp1)
        cw, ch, dk = cw1, ch1, dk1

    # --- rational quadratic transform -----------------------------------------
    inv_w = 1.0 / in_w
    in_delta = in_h * inv_w
    theta = (xin - in_cumw) * inv_w
    t1mt = theta * (1.0 - theta)
    numerator = in_h * (in_delta * theta * theta + in_d * t1mt)
    denom = in_delta + (in_d + in_dp1 - 2.0 * in_delta) * t1mt
    inv_den = 1.0 / denom
    y_in = in_cumh + numerator * inv_den
    deriv_num = (in_delta * in_delta) * (in_dp1 * theta * theta
                                         + 2.0 * in_delta * t1mt
                                         + in_d * (1.0 - theta) * (1.0 - theta))
    lad = jnp.log(deriv_num * (inv_den * inv_den))     # log(dn) - 2*log(den)

    inside = (x_in >= -TAIL) & (x_in <= TAIL)
    y = jnp.where(inside, y_in, x_in)
    ld = jnp.where(inside, lad, 0.0)
    return y, ld


# ---- the Pallas kernel -------------------------------------------------------
def nsf_cl_kernel(x_ref,
                  w1a_ref, w2a_ref, w3a_ref, w4a_ref, ba_ref,
                  w1b_ref, w2b_ref, w3b_ref, w4b_ref, bb_ref,
                  z_ref, ld_ref, *, d2):
    x = x_ref[...]                          # (2*dp, TB) — batch on lanes
    dp = x.shape[0] // 2
    lower = x[:dp, :]
    upper = x[dp:, :]

    # step 1: params from f1(lower), transform upper
    out1 = _mlp_t(lower, w1a_ref[...], w2a_ref[...], w3a_ref[...], w4a_ref[...],
                  ba_ref[...])
    upper_new, ld1 = _spline_forward_t(out1, upper, dp)

    # step 2: params from f2(new upper), transform lower
    out2 = _mlp_t(upper_new, w1b_ref[...], w2b_ref[...], w3b_ref[...], w4b_ref[...],
                  bb_ref[...])
    lower_new, ld2 = _spline_forward_t(out2, lower, dp)

    # 8-sublane-aligned, lane-dense stores
    z_ref[:dp, :] = lower_new
    z_ref[dp:, :] = upper_new

    ld = ld1 + ld2
    if d2 != dp:                            # mask the feature-pad rows
        row = jax.lax.broadcasted_iota(jnp.int32, ld.shape, 0)
        ld = jnp.where(row < d2, ld, 0.0)
    ld_ref[...] = jnp.sum(ld, axis=0, keepdims=True)


# ---- host-side parameter preparation -----------------------------------------
def _prep_params(p, d2, dp, nparams, mlp_dtype=jnp.float32):
    """Transpose weights for the (features, TB) layout, permute + zero-pad the
    head so spline param p occupies rows [p*dp : p*dp + d2] of the MLP output,
    and pack all biases into one 8-row-aligned column array."""
    w1, b1, w2, b2, w3, b3, w4, b4 = p
    nh = w1.shape[1]
    nhp = _round_up(nh, 8)

    w1t = jnp.zeros((nh, dp), jnp.float32).at[:, :d2].set(w1.T)
    w2t = w2.T.astype(jnp.float32)
    w3t = w3.T.astype(jnp.float32)

    # PyTorch head column order: j*nparams + p  ->  kernel row order: p*dp + j
    w4r = jnp.transpose(w4.reshape(nh, d2, nparams), (2, 1, 0))          # (p, j, nh)
    w4p = jnp.zeros((nparams, dp, nh), jnp.float32).at[:, :d2, :].set(w4r)
    w4p = w4p.reshape(nparams * dp, nh)

    b4r = b4.reshape(d2, nparams).T                                      # (p, j)
    b4p = jnp.zeros((nparams, dp), jnp.float32).at[:, :d2].set(b4r)
    b4p = b4p.reshape(nparams * dp, 1)

    bpack = jnp.zeros((3 * nhp + nparams * dp, 1), jnp.float32)
    bpack = bpack.at[0:nh, 0].set(b1.reshape(-1))
    bpack = bpack.at[nhp:nhp + nh, 0].set(b2.reshape(-1))
    bpack = bpack.at[2 * nhp:2 * nhp + nh, 0].set(b3.reshape(-1))
    bpack = bpack.at[3 * nhp:, :].set(b4p)

    return (w1t.astype(mlp_dtype), w2t.astype(mlp_dtype), w3t.astype(mlp_dtype),
            w4p.astype(mlp_dtype), bpack)


# ---- wrapper -----------------------------------------------------------------
def nsf_cl_forward(x, p1, p2, tb_max=2048, mlp_dtype=jnp.float32):
    """Forward pass of NSF_CL. x: (batch, dim). Returns (z, log_det).

    tb_max: batch tile (multiple of 128); the kernel is compute-bound so the
            I/O tile footprint is tiny — sweep 1024..4096.
    mlp_dtype: set to jnp.bfloat16 on v6e/v7x to halve MLP cost; keep f32 on v5e.
    """
    bs, dim = x.shape
    d2 = dim // 2
    dp = _round_up(d2, 8)                   # 8-sublane-aligned feature pad
    nparams = 3 * K - 1

    TB = min(tb_max, _round_up(bs, 128))
    bsp = _round_up(bs, TB)

    xt = x.T.astype(jnp.float32)            # (dim, bs)
    x_pad = jnp.zeros((2 * dp, bsp), jnp.float32)
    x_pad = x_pad.at[:d2, :bs].set(xt[:d2])
    x_pad = x_pad.at[dp:dp + d2, :bs].set(xt[d2:])

    pa = _prep_params(p1, d2, dp, nparams, mlp_dtype)
    pb = _prep_params(p2, d2, dp, nparams, mlp_dtype)
    args = (x_pad,) + pa + pb

    in_specs = [pl.BlockSpec((2 * dp, TB), lambda i: (0, i))]
    for a in pa + pb:
        # weights / bias packs: full-array block, constant index -> VMEM-resident
        in_specs.append(pl.BlockSpec(a.shape, lambda i: (0, 0)))

    z_t, ld_t = pl.pallas_call(
        partial(nsf_cl_kernel, d2=d2),
        grid=(bsp // TB,),
        out_shape=(jax.ShapeDtypeStruct((2 * dp, bsp), jnp.float32),
                   jax.ShapeDtypeStruct((1, bsp), jnp.float32)),
        in_specs=in_specs,
        out_specs=(pl.BlockSpec((2 * dp, TB), lambda i: (0, i)),
                   pl.BlockSpec((1, TB), lambda i: (0, i))),
        compiler_params=pltpu.CompilerParams(
            dimension_semantics=("parallel",),
            vmem_limit_bytes=32 * 1024 * 1024),
    )(*args)

    z = jnp.concatenate([z_t[:d2], z_t[dp:dp + d2]], axis=0)[:, :bs].T
    return z, ld_t[0, :bs]


# ---- pure-JAX reference (mirrors the PyTorch code) ---------------------------
def _mlp_ref(x, p):
    w1, b1, w2, b2, w3, b3, w4, b4 = p
    h = jax.nn.leaky_relu(x @ w1 + b1, 0.2)
    h = jax.nn.leaky_relu(h @ w2 + b2, 0.2)
    h = jax.nn.leaky_relu(h @ w3 + b3, 0.2)
    return h @ w4 + b4


def _rqs_ref(x, Wu, Hu, Du):
    inside = (x >= -TAIL) & (x <= TAIL)
    xin = jnp.clip(x, -TAIL, TAIL)
    nb = Wu.shape[-1]

    widths = jax.nn.softmax(Wu, axis=-1)
    widths = MIN_BW + (1 - MIN_BW * nb) * widths
    cumw = jnp.concatenate([jnp.zeros(widths.shape[:-1] + (1,)), jnp.cumsum(widths, -1)], -1)
    cumw = 2 * TAIL * cumw - TAIL
    cumw = cumw.at[..., 0].set(-TAIL).at[..., -1].set(TAIL)
    wbins = cumw[..., 1:] - cumw[..., :-1]

    heights = jax.nn.softmax(Hu, axis=-1)
    heights = MIN_BH + (1 - MIN_BH * nb) * heights
    cumh = jnp.concatenate([jnp.zeros(heights.shape[:-1] + (1,)), jnp.cumsum(heights, -1)], -1)
    cumh = 2 * TAIL * cumh - TAIL
    cumh = cumh.at[..., 0].set(-TAIL).at[..., -1].set(TAIL)
    hbins = cumh[..., 1:] - cumh[..., :-1]

    pad = jnp.full(Du.shape[:-1] + (1,), _DERIV_CONST, Du.dtype)
    derivs = MIN_D + jax.nn.softplus(jnp.concatenate([pad, Du, pad], -1))

    locs = cumw.at[..., -1].add(EPS)
    idx = jnp.sum((xin[..., None] >= locs).astype(jnp.int32), -1) - 1
    idxe = idx[..., None]
    g = lambda a: jnp.take_along_axis(a, idxe, -1)[..., 0]

    in_cw, in_w = g(cumw), g(wbins)
    in_ch, in_h = g(cumh), g(hbins)
    in_delta = g(hbins / wbins)
    in_d, in_dp1 = g(derivs), g(derivs[..., 1:])

    theta = (xin - in_cw) / in_w
    t1mt = theta * (1 - theta)
    num = in_h * (in_delta * theta ** 2 + in_d * t1mt)
    den = in_delta + (in_d + in_dp1 - 2 * in_delta) * t1mt
    y_in = in_ch + num / den
    dnum = in_delta ** 2 * (in_dp1 * theta ** 2 + 2 * in_delta * t1mt + in_d * (1 - theta) ** 2)
    lad = jnp.log(dnum) - 2 * jnp.log(den)

    return jnp.where(inside, y_in, x), jnp.where(inside, lad, 0.0)


def nsf_cl_forward_ref(x, p1, p2):
    d2 = x.shape[1] // 2
    lower, upper = x[:, :d2], x[:, d2:]

    out = _mlp_ref(lower, p1).reshape(-1, d2, 3 * K - 1)
    Wu, Hu, Du = out[..., :K], out[..., K:2 * K], out[..., 2 * K:]
    Wu, Hu = 2 * TAIL * jax.nn.softmax(Wu, -1), 2 * TAIL * jax.nn.softmax(Hu, -1)
    Du = jax.nn.softplus(Du)
    upper, ld1 = _rqs_ref(upper, Wu, Hu, Du)

    out = _mlp_ref(upper, p2).reshape(-1, d2, 3 * K - 1)
    Wu, Hu, Du = out[..., :K], out[..., K:2 * K], out[..., 2 * K:]
    Wu, Hu = 2 * TAIL * jax.nn.softmax(Wu, -1), 2 * TAIL * jax.nn.softmax(Hu, -1)
    Du = jax.nn.softplus(Du)
    lower, ld2 = _rqs_ref(lower, Wu, Hu, Du)

    return jnp.concatenate([lower, upper], 1), jnp.sum(ld1, 1) + jnp.sum(ld2, 1)


# ---- parameter init (deterministic, PyTorch Linear-style uniform) ------------
def init_mlp_params(key, nin, nout, nh):
    ks = jax.random.split(key, 8)

    def lin(kw, kb, fi, fo):
        bound = 1.0 / np.sqrt(fi)
        w = jax.random.uniform(kw, (fi, fo), jnp.float32, -bound, bound)
        b = jax.random.uniform(kb, (1, fo), jnp.float32, -bound, bound)
        return w, b

    w1, b1 = lin(ks[0], ks[1], nin, nh)
    w2, b2 = lin(ks[2], ks[3], nh, nh)
    w3, b3 = lin(ks[4], ks[5], nh, nh)
    w4, b4 = lin(ks[6], ks[7], nh, nout)
    return (w1, b1, w2, b2, w3, b3, w4, b4)


if __name__ == "__main__":
    DIM, BATCH, HIDDEN = 8, 8, 6
    d2 = DIM // 2
    nout = (3 * K - 1) * d2

    key = jax.random.PRNGKey(0)
    kx, k1, k2 = jax.random.split(key, 3)
    x = (jax.random.normal(kx, (BATCH, DIM), jnp.float32) * 3.0)

    p1 = init_mlp_params(k1, d2, nout, HIDDEN)
    p2 = init_mlp_params(k2, d2, nout, HIDDEN)

    z, log_det = nsf_cl_forward(x, p1, p2)
    jax.block_until_ready((z, log_det))

    z_ref, ld_ref = nsf_cl_forward_ref(x, p1, p2)
    assert z.shape == (BATCH, DIM) and log_det.shape == (BATCH,)
    assert np.allclose(np.asarray(z), np.asarray(z_ref), atol=1e-3, rtol=1e-3)
    assert np.allclose(np.asarray(log_det), np.asarray(ld_ref), atol=1e-3, rtol=1e-3)
    print("KERNEL_OK")
</pallas_src>

<mosaic_0001>
module attributes {stable_mosaic.version = 11 : i64} {
  func.func @nsf_cl_kernel(%arg0: i32, %arg1: memref<16x128xf32, #tpu.memory_space<vmem>>, %arg2: memref<6x8xf32, #tpu.memory_space<vmem>>, %arg3: memref<6x6xf32, #tpu.memory_space<vmem>>, %arg4: memref<6x6xf32, #tpu.memory_space<vmem>>, %arg5: memref<112x6xf32, #tpu.memory_space<vmem>>, %arg6: memref<136x1xf32, #tpu.memory_space<vmem>>, %arg7: memref<6x8xf32, #tpu.memory_space<vmem>>, %arg8: memref<6x6xf32, #tpu.memory_space<vmem>>, %arg9: memref<6x6xf32, #tpu.memory_space<vmem>>, %arg10: memref<112x6xf32, #tpu.memory_space<vmem>>, %arg11: memref<136x1xf32, #tpu.memory_space<vmem>>, %arg12: memref<16x128xf32, #tpu.memory_space<vmem>>, %arg13: memref<1x128xf32, #tpu.memory_space<vmem>>) attributes {dimension_semantics = [#tpu.dimension_semantics<parallel>], iteration_bounds = array<i64: 1>, scalar_prefetch = 0 : i64, scratch_operands = 0 : i64, tpu.core_type = #tpu.core_type<tc>, window_params = [{transform_indices = @transform_0, window_bounds = array<i64: 16, 128>}, {pipeline_mode = #tpu.pipeline_mode<synchronous>, transform_indices = @transform_1, window_bounds = array<i64: 6, 8>}, {pipeline_mode = #tpu.pipeline_mode<synchronous>, transform_indices = @transform_2, window_bounds = array<i64: 6, 6>}, {pipeline_mode = #tpu.pipeline_mode<synchronous>, transform_indices = @transform_3, window_bounds = array<i64: 6, 6>}, {pipeline_mode = #tpu.pipeline_mode<synchronous>, transform_indices = @transform_4, window_bounds = array<i64: 112, 6>}, {pipeline_mode = #tpu.pipeline_mode<synchronous>, transform_indices = @transform_5, window_bounds = array<i64: 136, 1>}, {pipeline_mode = #tpu.pipeline_mode<synchronous>, transform_indices = @transform_6, window_bounds = array<i64: 6, 8>}, {pipeline_mode = #tpu.pipeline_mode<synchronous>, transform_indices = @transform_7, window_bounds = array<i64: 6, 6>}, {pipeline_mode = #tpu.pipeline_mode<synchronous>, transform_indices = @transform_8, window_bounds = array<i64: 6, 6>}, {pipeline_mode = #tpu.pipeline_mode<synchronous>, transform_indices = @transform_9, window_bounds = array<i64: 112, 6>}, {pipeline_mode = #tpu.pipeline_mode<synchronous>, transform_indices = @transform_10, window_bounds = array<i64: 136, 1>}, {transform_indices = @transform_11, window_bounds = array<i64: 16, 128>}, {transform_indices = @transform_12, window_bounds = array<i64: 1, 128>}]} {
    %c0 = arith.constant 0 : index
    %c0_0 = arith.constant 0 : index
    %0 = vector.load %arg1[%c0, %c0_0] : memref<16x128xf32, #tpu.memory_space<vmem>>, vector<16x128xf32>
    %1 = vector.extract_strided_slice %0 {offsets = [0, 0], sizes = [8, 128], strides = [1, 1]} : vector<16x128xf32> to vector<8x128xf32>
    %2 = vector.extract_strided_slice %0 {offsets = [8, 0], sizes = [8, 128], strides = [1, 1]} : vector<16x128xf32> to vector<8x128xf32>
    %c0_1 = arith.constant 0 : index
    %c0_2 = arith.constant 0 : index
    %3 = vector.load %arg2[%c0_1, %c0_2] : memref<6x8xf32, #tpu.memory_space<vmem>>, vector<6x8xf32>
    %c0_3 = arith.constant 0 : index
    %c0_4 = arith.constant 0 : index
    %4 = vector.load %arg3[%c0_3, %c0_4] : memref<6x6xf32, #tpu.memory_space<vmem>>, vector<6x6xf32>
    %c0_5 = arith.constant 0 : index
    %c0_6 = arith.constant 0 : index
    %5 = vector.load %arg4[%c0_5, %c0_6] : memref<6x6xf32, #tpu.memory_space<vmem>>, vector<6x6xf32>
    %c0_7 = arith.constant 0 : index
    %c0_8 = arith.constant 0 : index
    %6 = vector.load %arg5[%c0_7, %c0_8] : memref<112x6xf32, #tpu.memory_space<vmem>>, vector<112x6xf32>
    %c0_9 = arith.constant 0 : index
    %c0_10 = arith.constant 0 : index
    %7 = vector.load %arg6[%c0_9, %c0_10] : memref<136x1xf32, #tpu.memory_space<vmem>>, vector<136x1xf32>
    %8 = vector.extract_strided_slice %7 {offsets = [0, 0], sizes = [6, 1], strides = [1, 1]} : vector<136x1xf32> to vector<6x1xf32>
    %9 = vector.extract_strided_slice %7 {offsets = [8, 0], sizes = [6, 1], strides = [1, 1]} : vector<136x1xf32> to vector<6x1xf32>
    %10 = vector.extract_strided_slice %7 {offsets = [16, 0], sizes = [6, 1], strides = [1, 1]} : vector<136x1xf32> to vector<6x1xf32>
    %11 = vector.extract_strided_slice %7 {offsets = [24, 0], sizes = [112, 1], strides = [1, 1]} : vector<136x1xf32> to vector<112x1xf32>
    %cst = arith.constant dense<0.000000e+00> : vector<6x128xf32>
    %12 = tpu.matmul %3, %1, %cst {dimension_numbers = #tpu.dot_dimension_numbers<[1], [0], [0], [1], [0, 0, 1, 1], [], []>} : vector<6x8xf32>, vector<8x128xf32>, vector<6x128xf32> -> vector<6x128xf32>
    %13 = vector.broadcast %8 : vector<6x1xf32> to vector<6x128xf32>
    %14 = arith.addf %12, %13 : vector<6x128xf32>
    %cst_11 = arith.constant 0.000000e+00 : f32
    %15 = vector.broadcast %cst_11 : f32 to vector<6x128xf32>
    %16 = arith.cmpf ogt, %14, %15 : vector<6x128xf32>
    %cst_12 = arith.constant 2.000000e-01 : f32
    %17 = vector.broadcast %cst_12 : f32 to vector<6x128xf32>
    %18 = arith.mulf %17, %14 : vector<6x128xf32>
    %19 = arith.select %16, %14, %18 : vector<6x128xi1>, vector<6x128xf32>
    %cst_13 = arith.constant dense<0.000000e+00> : vector<6x128xf32>
    %20 = tpu.matmul %4, %19, %cst_13 {dimension_numbers = #tpu.dot_dimension_numbers<[1], [0], [0], [1], [0, 0, 1, 1], [], []>} : vector<6x6xf32>, vector<6x128xf32>, vector<6x128xf32> -> vector<6x128xf32>
    %21 = vector.broadcast %9 : vector<6x1xf32> to vector<6x128xf32>
    %22 = arith.addf %20, %21 : vector<6x128xf32>
    %cst_14 = arith.constant 0.000000e+00 : f32
    %23 = vector.broadcast %cst_14 : f32 to vector<6x128xf32>
    %24 = arith.cmpf ogt, %22, %23 : vector<6x128xf32>
    %cst_15 = arith.constant 2.000000e-01 : f32
    %25 = vector.broadcast %cst_15 : f32 to vector<6x128xf32>
    %26 = arith.mulf %25, %22 : vector<6x128xf32>
    %27 = arith.select %24, %22, %26 : vector<6x128xi1>, vector<6x128xf32>
    %cst_16 = arith.constant dense<0.000000e+00> : vector<6x128xf32>
    %28 = tpu.matmul %5, %27, %cst_16 {dimension_numbers = #tpu.dot_dimension_numbers<[1], [0], [0], [1], [0, 0, 1, 1], [], []>} : vector<6x6xf32>, vector<6x128xf32>, vector<6x128xf32> -> vector<6x128xf32>
    %29 = vector.broadcast %10 : vector<6x1xf32> to vector<6x128xf32>
    %30 = arith.addf %28, %29 : vector<6x128xf32>
    %cst_17 = arith.constant 0.000000e+00 : f32
    %31 = vector.broadcast %cst_17 : f32 to vector<6x128xf32>
    %32 = arith.cmpf ogt, %30, %31 : vector<6x128xf32>
    %cst_18 = arith.constant 2.000000e-01 : f32
    %33 = vector.broadcast %cst_18 : f32 to vector<6x128xf32>
    %34 = arith.mulf %33, %30 : vector<6x128xf32>
    %35 = arith.select %32, %30, %34 : vector<6x128xi1>, vector<6x128xf32>
    %cst_19 = arith.constant dense<0.000000e+00> : vector<112x128xf32>
    %36 = tpu.matmul %6, %35, %cst_19 {dimension_numbers = #tpu.dot_dimension_numbers<[1], [0], [0], [1], [0, 0, 1, 1], [], []>} : vector<112x6xf32>, vector<6x128xf32>, vector<112x128xf32> -> vector<112x128xf32>
    %37 = vector.broadcast %11 : vector<112x1xf32> to vector<112x128xf32>
    %38 = arith.addf %36, %37 : vector<112x128xf32>
    %39 = vector.extract_strided_slice %38 {offsets = [0, 0], sizes = [8, 128], strides = [1, 1]} : vector<112x128xf32> to vector<8x128xf32>
    %40 = vector.extract_strided_slice %38 {offsets = [8, 0], sizes = [8, 128], strides = [1, 1]} : vector<112x128xf32> to vector<8x128xf32>
    %41 = vector.extract_strided_slice %38 {offsets = [16, 0], sizes = [8, 128], strides = [1, 1]} : vector<112x128xf32> to vector<8x128xf32>
    %42 = vector.extract_strided_slice %38 {offsets = [24, 0], sizes = [8, 128], strides = [1, 1]} : vector<112x128xf32> to vector<8x128xf32>
    %43 = vector.extract_strided_slice %38 {offsets = [32, 0], sizes = [8, 128], strides = [1, 1]} : vector<112x128xf32> to vector<8x128xf32>
    %44 = arith.maximumf %39, %40 : vector<8x128xf32>
    %45 = arith.maximumf %44, %41 : vector<8x128xf32>
    %46 = arith.maximumf %45, %42 : vector<8x128xf32>
    %47 = arith.maximumf %46, %43 : vector<8x128xf32>
    %48 = arith.subf %39, %47 : vector<8x128xf32>
    %49 = math.exp %48 : vector<8x128xf32>
    %50 = arith.subf %40, %47 : vector<8x128xf32>
    %51 = math.exp %50 : vector<8x128xf32>
    %52 = arith.subf %41, %47 : vector<8x128xf32>
    %53 = math.exp %52 : vector<8x128xf32>
    %54 = arith.subf %42, %47 : vector<8x128xf32>
    %55 = math.exp %54 : vector<8x128xf32>
    %56 = arith.subf %43, %47 : vector<8x128xf32>
    %57 = math.exp %56 : vector<8x128xf32>
    %58 = arith.addf %49, %51 : vector<8x128xf32>
    %59 = arith.addf %58, %53 : vector<8x128xf32>
    %60 = arith.addf %59, %55 : vector<8x128xf32>
    %61 = arith.addf %60, %57 : vector<8x128xf32>
    %cst_20 = arith.constant 8.000000e+00 : f32
    %62 = vector.broadcast %cst_20 : f32 to vector<8x128xf32>
    %63 = arith.divf %62, %61 : vector<8x128xf32>
    %64 = arith.mulf %49, %63 : vector<8x128xf32>
    %65 = arith.mulf %51, %63 : vector<8x128xf32>
    %66 = arith.mulf %53, %63 : vector<8x128xf32>
    %67 = arith.mulf %55, %63 : vector<8x128xf32>
    %68 = arith.mulf %57, %63 : vector<8x128xf32>
    %69 = math.exp %64 : vector<8x128xf32>
    %70 = math.exp %65 : vector<8x128xf32>
    %71 = math.exp %66 : vector<8x128xf32>
    %72 = math.exp %67 : vector<8x128xf32>
    %73 = math.exp %68 : vector<8x128xf32>
    %74 = arith.addf %69, %70 : vector<8x128xf32>
    %75 = arith.addf %74, %71 : vector<8x128xf32>
    %76 = arith.addf %75, %72 : vector<8x128xf32>
    %77 = arith.addf %76, %73 : vector<8x128xf32>
    %cst_21 = arith.constant 9.950000e-01 : f32
    %78 = vector.broadcast %cst_21 : f32 to vector<8x128xf32>
    %79 = arith.divf %78, %77 : vector<8x128xf32>
    %80 = arith.mulf %69, %79 : vector<8x128xf32>
    %cst_22 = arith.constant 1.000000e-03 : f32
    %81 = vector.broadcast %cst_22 : f32 to vector<8x128xf32>
    %82 = arith.addf %81, %80 : vector<8x128xf32>
    %83 = arith.mulf %70, %79 : vector<8x128xf32>
    %cst_23 = arith.constant 1.000000e-03 : f32
    %84 = vector.broadcast %cst_23 : f32 to vector<8x128xf32>
    %85 = arith.addf %84, %83 : vector<8x128xf32>
    %86 = arith.mulf %71, %79 : vector<8x128xf32>
    %cst_24 = arith.constant 1.000000e-03 : f32
    %87 = vector.broadcast %cst_24 : f32 to vector<8x128xf32>
    %88 = arith.addf %87, %86 : vector<8x128xf32>
    %89 = arith.mulf %72, %79 : vector<8x128xf32>
    %cst_25 = arith.constant 1.000000e-03 : f32
    %90 = vector.broadcast %cst_25 : f32 to vector<8x128xf32>
    %91 = arith.addf %90, %89 : vector<8x128xf32>
    %92 = vector.extract_strided_slice %38 {offsets = [40, 0], sizes = [8, 128], strides = [1, 1]} : vector<112x128xf32> to vector<8x128xf32>
    %93 = vector.extract_strided_slice %38 {offsets = [48, 0], sizes = [8, 128], strides = [1, 1]} : vector<112x128xf32> to vector<8x128xf32>
    %94 = vector.extract_strided_slice %38 {offsets = [56, 0], sizes = [8, 128], strides = [1, 1]} : vector<112x128xf32> to vector<8x128xf32>
    %95 = vector.extract_strided_slice %38 {offsets = [64, 0], sizes = [8, 128], strides = [1, 1]} : vector<112x128xf32> to vector<8x128xf32>
    %96 = vector.extract_strided_slice %38 {offsets = [72, 0], sizes = [8, 128], strides = [1, 1]} : vector<112x128xf32> to vector<8x128xf32>
    %97 = arith.maximumf %92, %93 : vector<8x128xf32>
    %98 = arith.maximumf %97, %94 : vector<8x128xf32>
    %99 = arith.maximumf %98, %95 : vector<8x128xf32>
    %100 = arith.maximumf %99, %96 : vector<8x128xf32>
    %101 = arith.subf %92, %100 : vector<8x128xf32>
    %102 = math.exp %101 : vector<8x128xf32>
    %103 = arith.subf %93, %100 : vector<8x128xf32>
    %104 = math.exp %103 : vector<8x128xf32>
    %105 = arith.subf %94, %100 : vector<8x128xf32>
    %106 = math.exp %105 : vector<8x128xf32>
    %107 = arith.subf %95, %100 : vector<8x128xf32>
    %108 = math.exp %107 : vector<8x128xf32>
    %109 = arith.subf %96, %100 : vector<8x128xf32>
    %110 = math.exp %109 : vector<8x128xf32>
    %111 = arith.addf %102, %104 : vector<8x128xf32>
    %112 = arith.addf %111, %106 : vector<8x128xf32>
    %113 = arith.addf %112, %108 : vector<8x128xf32>
    %114 = arith.addf %113, %110 : vector<8x128xf32>
    %cst_26 = arith.constant 8.000000e+00 : f32
    %115 = vector.broadcast %cst_26 : f32 to vector<8x128xf32>
    %116 = arith.divf %115, %114 : vector<8x128xf32>
    %117 = arith.mulf %102, %116 : vector<8x128xf32>
    %118 = arith.mulf %104, %116 : vector<8x128xf32>
    %119 = arith.mulf %106, %116 : vector<8x128xf32>
    %120 = arith.mulf %108, %116 : vector<8x128xf32>
    %121 = arith.mulf %110, %116 : vector<8x128xf32>
    %122 = math.exp %117 : vector<8x128xf32>
    %123 = math.exp %118 : vector<8x128xf32>
    %124 = math.exp %119 : vector<8x128xf32>
    %125 = math.exp %120 : vector<8x128xf32>
    %126 = math.exp %121 : vector<8x128xf32>
    %127 = arith.addf %122, %123 : vector<8x128xf32>
    %128 = arith.addf %127, %124 : vector<8x128xf32>
    %129 = arith.addf %128, %125 : vector<8x128xf32>
    %130 = arith.addf %129, %126 : vector<8x128xf32>
    %cst_27 = arith.constant 9.950000e-01 : f32
    %131 = vector.broadcast %cst_27 : f32 to vector<8x128xf32>
    %132 = arith.divf %131, %130 : vector<8x128xf32>
    %133 = arith.mulf %122, %132 : vector<8x128xf32>
    %cst_28 = arith.constant 1.000000e-03 : f32
    %134 = vector.broadcast %cst_28 : f32 to vector<8x128xf32>
    %135 = arith.addf %134, %133 : vector<8x128xf32>
    %136 = arith.mulf %123, %132 : vector<8x128xf32>
    %cst_29 = arith.constant 1.000000e-03 : f32
    %137 = vector.broadcast %cst_29 : f32 to vector<8x128xf32>
    %138 = arith.addf %137, %136 : vector<8x128xf32>
    %139 = arith.mulf %124, %132 : vector<8x128xf32>
    %cst_30 = arith.constant 1.000000e-03 : f32
    %140 = vector.broadcast %cst_30 : f32 to vector<8x128xf32>
    %141 = arith.addf %140, %139 : vector<8x128xf32>
    %142 = arith.mulf %125, %132 : vector<8x128xf32>
    %cst_31 = arith.constant 1.000000e-03 : f32
    %143 = vector.broadcast %cst_31 : f32 to vector<8x128xf32>
    %144 = arith.addf %143, %142 : vector<8x128xf32>
    %cst_32 = arith.constant -4.000000e+00 : f32
    %cst_33 = arith.constant 4.000000e+00 : f32
    %145 = vector.broadcast %cst_32 : f32 to vector<8x128xf32>
    %146 = arith.maximumf %145, %2 : vector<8x128xf32>
    %147 = vector.broadcast %cst_33 : f32 to vector<8x128xf32>
    %148 = arith.minimumf %147, %146 : vector<8x128xf32>
    %cst_34 = arith.constant 8.000000e+00 : f32
    %149 = vector.broadcast %cst_34 : f32 to vector<8x128xf32>
    %150 = arith.mulf %149, %82 : vector<8x128xf32>
    %cst_35 = arith.constant 4.000000e+00 : f32
    %151 = vector.broadcast %cst_35 : f32 to vector<8x128xf32>
    %152 = arith.subf %150, %151 : vector<8x128xf32>
    %cst_36 = arith.constant 8.000000e+00 : f32
    %153 = vector.broadcast %cst_36 : f32 to vector<8x128xf32>
    %154 = arith.mulf %153, %135 : vector<8x128xf32>
    %cst_37 = arith.constant 4.000000e+00 : f32
    %155 = vector.broadcast %cst_37 : f32 to vector<8x128xf32>
    %156 = arith.subf %154, %155 : vector<8x128xf32>
    %157 = vector.extract_strided_slice %38 {offsets = [80, 0], sizes = [8, 128], strides = [1, 1]} : vector<112x128xf32> to vector<8x128xf32>
    %cst_38 = arith.constant 0.000000e+00 : f32
    %158 = vector.broadcast %cst_38 : f32 to vector<8x128xf32>
    %159 = arith.maximumf %157, %158 : vector<8x128xf32>
    %160 = math.absf %157 : vector<8x128xf32>
    %cst_39 = arith.constant 0.000000e+00 : f32
    %161 = vector.broadcast %cst_39 : f32 to vector<8x128xf32>
    %162 = arith.subf %161, %160 : vector<8x128xf32>
    %163 = math.exp %162 : vector<8x128xf32>
    %cst_40 = arith.constant 1.000000e+00 : f32
    %164 = vector.broadcast %cst_40 : f32 to vector<8x128xf32>
    %165 = arith.addf %164, %163 : vector<8x128xf32>
    %166 = math.log %165 : vector<8x128xf32>
    %167 = arith.addf %159, %166 : vector<8x128xf32>
    %cst_41 = arith.constant 0.000000e+00 : f32
    %168 = vector.broadcast %cst_41 : f32 to vector<8x128xf32>
    %169 = arith.maximumf %167, %168 : vector<8x128xf32>
    %170 = math.absf %167 : vector<8x128xf32>
    %cst_42 = arith.constant 0.000000e+00 : f32
    %171 = vector.broadcast %cst_42 : f32 to vector<8x128xf32>
    %172 = arith.subf %171, %170 : vector<8x128xf32>
    %173 = math.exp %172 : vector<8x128xf32>
    %cst_43 = arith.constant 1.000000e+00 : f32
    %174 = vector.broadcast %cst_43 : f32 to vector<8x128xf32>
    %175 = arith.addf %174, %173 : vector<8x128xf32>
    %176 = math.log %175 : vector<8x128xf32>
    %177 = arith.addf %169, %176 : vector<8x128xf32>
    %cst_44 = arith.constant 1.000000e-03 : f32
    %178 = vector.broadcast %cst_44 : f32 to vector<8x128xf32>
    %179 = arith.addf %178, %177 : vector<8x128xf32>
    %cst_45 = arith.constant 4.000000e+00 : f32
    %180 = vector.broadcast %cst_45 : f32 to vector<8x128xf32>
    %181 = arith.addf %152, %180 : vector<8x128xf32>
    %cst_46 = arith.constant 4.000000e+00 : f32
    %182 = vector.broadcast %cst_46 : f32 to vector<8x128xf32>
    %183 = arith.addf %156, %182 : vector<8x128xf32>
    %184 = arith.addf %82, %85 : vector<8x128xf32>
    %185 = arith.addf %135, %138 : vector<8x128xf32>
    %cst_47 = arith.constant 8.000000e+00 : f32
    %186 = vector.broadcast %cst_47 : f32 to vector<8x128xf32>
    %187 = arith.mulf %186, %184 : vector<8x128xf32>
    %cst_48 = arith.constant 4.000000e+00 : f32
    %188 = vector.broadcast %cst_48 : f32 to vector<8x128xf32>
    %189 = arith.subf %187, %188 : vector<8x128xf32>
    %cst_49 = arith.constant 8.000000e+00 : f32
    %190 = vector.broadcast %cst_49 : f32 to vector<8x128xf32>
    %191 = arith.mulf %190, %185 : vector<8x128xf32>
    %cst_50 = arith.constant 4.000000e+00 : f32
    %192 = vector.broadcast %cst_50 : f32 to vector<8x128xf32>
    %193 = arith.subf %191, %192 : vector<8x128xf32>
    %194 = vector.extract_strided_slice %38 {offsets = [88, 0], sizes = [8, 128], strides = [1, 1]} : vector<112x128xf32> to vector<8x128xf32>
    %cst_51 = arith.constant 0.000000e+00 : f32
    %195 = vector.broadcast %cst_51 : f32 to vector<8x128xf32>
    %196 = arith.maximumf %194, %195 : vector<8x128xf32>
    %197 = math.absf %194 : vector<8x128xf32>
    %cst_52 = arith.constant 0.000000e+00 : f32
    %198 = vector.broadcast %cst_52 : f32 to vector<8x128xf32>
    %199 = arith.subf %198, %197 : vector<8x128xf32>
    %200 = math.exp %199 : vector<8x128xf32>
    %cst_53 = arith.constant 1.000000e+00 : f32
    %201 = vector.broadcast %cst_53 : f32 to vector<8x128xf32>
    %202 = arith.addf %201, %200 : vector<8x128xf32>
    %203 = math.log %202 : vector<8x128xf32>
    %204 = arith.addf %196, %203 : vector<8x128xf32>
    %cst_54 = arith.constant 0.000000e+00 : f32
    %205 = vector.broadcast %cst_54 : f32 to vector<8x128xf32>
    %206 = arith.maximumf %204, %205 : vector<8x128xf32>
    %207 = math.absf %204 : vector<8x128xf32>
    %cst_55 = arith.constant 0.000000e+00 : f32
    %208 = vector.broadcast %cst_55 : f32 to vector<8x128xf32>
    %209 = arith.subf %208, %207 : vector<8x128xf32>
    %210 = math.exp %209 : vector<8x128xf32>
    %cst_56 = arith.constant 1.000000e+00 : f32
    %211 = vector.broadcast %cst_56 : f32 to vector<8x128xf32>
    %212 = arith.addf %211, %210 : vector<8x128xf32>
    %213 = math.log %212 : vector<8x128xf32>
    %214 = arith.addf %206, %213 : vector<8x128xf32>
    %cst_57 = arith.constant 1.000000e-03 : f32
    %215 = vector.broadcast %cst_57 : f32 to vector<8x128xf32>
    %216 = arith.addf %215, %214 : vector<8x128xf32>
    %217 = arith.cmpf oge, %148, %152 : vector<8x128xf32>
    %cst_58 = arith.constant -4.000000e+00 : f32
    %218 = vector.broadcast %cst_58 : f32 to vector<8x128xf32>
    %219 = arith.select %217, %152, %218 : vector<8x128xi1>, vector<8x128xf32>
    %cst_59 = arith.constant -4.000000e+00 : f32
    %220 = vector.broadcast %cst_59 : f32 to vector<8x128xf32>
    %221 = arith.select %217, %156, %220 : vector<8x128xi1>, vector<8x128xf32>
    %cst_60 = arith.constant 1.000000e+00 : f32
    %222 = vector.broadcast %cst_60 : f32 to vector<8x128xf32>
    %223 = arith.select %217, %179, %222 : vector<8x128xi1>, vector<8x128xf32>
    %224 = arith.subf %189, %152 : vector<8x128xf32>
    %225 = arith.select %217, %224, %181 : vector<8x128xi1>, vector<8x128xf32>
    %226 = arith.subf %193, %156 : vector<8x128xf32>
    %227 = arith.select %217, %226, %183 : vector<8x128xi1>, vector<8x128xf32>
    %228 = arith.select %217, %216, %179 : vector<8x128xi1>, vector<8x128xf32>
    %229 = arith.addf %184, %88 : vector<8x128xf32>
    %230 = arith.addf %185, %141 : vector<8x128xf32>
    %cst_61 = arith.constant 8.000000e+00 : f32
    %231 = vector.broadcast %cst_61 : f32 to vector<8x128xf32>
    %232 = arith.mulf %231, %229 : vector<8x128xf32>
    %cst_62 = arith.constant 4.000000e+00 : f32
    %233 = vector.broadcast %cst_62 : f32 to vector<8x128xf32>
    %234 = arith.subf %232, %233 : vector<8x128xf32>
    %cst_63 = arith.constant 8.000000e+00 : f32
    %235 = vector.broadcast %cst_63 : f32 to vector<8x128xf32>
    %236 = arith.mulf %235, %230 : vector<8x128xf32>
    %cst_64 = arith.constant 4.000000e+00 : f32
    %237 = vector.broadcast %cst_64 : f32 to vector<8x128xf32>
    %238 = arith.subf %236, %237 : vector<8x128xf32>
    %239 = vector.extract_strided_slice %38 {offsets = [96, 0], sizes = [8, 128], strides = [1, 1]} : vector<112x128xf32> to vector<8x128xf32>
    %cst_65 = arith.constant 0.000000e+00 : f32
    %240 = vector.broadcast %cst_65 : f32 to vector<8x128xf32>
    %241 = arith.maximumf %239, %240 : vector<8x128xf32>
    %242 = math.absf %239 : vector<8x128xf32>
    %cst_66 = arith.constant 0.000000e+00 : f32
    %243 = vector.broadcast %cst_66 : f32 to vector<8x128xf32>
    %244 = arith.subf %243, %242 : vector<8x128xf32>
    %245 = math.exp %244 : vector<8x128xf32>
    %cst_67 = arith.constant 1.000000e+00 : f32
    %246 = vector.broadcast %cst_67 : f32 to vector<8x128xf32>
    %247 = arith.addf %246, %245 : vector<8x128xf32>
    %248 = math.log %247 : vector<8x128xf32>
    %249 = arith.addf %241, %248 : vector<8x128xf32>
    %cst_68 = arith.constant 0.000000e+00 : f32
    %250 = vector.broadcast %cst_68 : f32 to vector<8x128xf32>
    %251 = arith.maximumf %249, %250 : vector<8x128xf32>
    %252 = math.absf %249 : vector<8x128xf32>
    %cst_69 = arith.constant 0.000000e+00 : f32
    %253 = vector.broadcast %cst_69 : f32 to vector<8x128xf32>
    %254 = arith.subf %253, %252 : vector<8x128xf32>
    %255 = math.exp %254 : vector<8x128xf32>
    %cst_70 = arith.constant 1.000000e+00 : f32
    %256 = vector.broadcast %cst_70 : f32 to vector<8x128xf32>
    %257 = arith.addf %256, %255 : vector<8x128xf32>
    %258 = math.log %257 : vector<8x128xf32>
    %259 = arith.addf %251, %258 : vector<8x128xf32>
    %cst_71 = arith.constant 1.000000e-03 : f32
    %260 = vector.broadcast %cst_71 : f32 to vector<8x128xf32>
    %261 = arith.addf %260, %259 : vector<8x128xf32>
    %262 = arith.cmpf oge, %148, %189 : vector<8x128xf32>
    %263 = arith.select %262, %189, %219 : vector<8x128xi1>, vector<8x128xf32>
    %264 = arith.select %262, %193, %221 : vector<8x128xi1>, vector<8x128xf32>
    %265 = arith.select %262, %216, %223 : vector<8x128xi1>, vector<8x128xf32>
    %266 = arith.subf %234, %189 : vector<8x128xf32>
    %267 = arith.select %262, %266, %225 : vector<8x128xi1>, vector<8x128xf32>
    %268 = arith.subf %238, %193 : vector<8x128xf32>
    %269 = arith.select %262, %268, %227 : vector<8x128xi1>, vector<8x128xf32>
    %270 = arith.select %262, %261, %228 : vector<8x128xi1>, vector<8x128xf32>
    %271 = arith.addf %229, %91 : vector<8x128xf32>
    %272 = arith.addf %230, %144 : vector<8x128xf32>
    %cst_72 = arith.constant 8.000000e+00 : f32
    %273 = vector.broadcast %cst_72 : f32 to vector<8x128xf32>
    %274 = arith.mulf %273, %271 : vector<8x128xf32>
    %cst_73 = arith.constant 4.000000e+00 : f32
    %275 = vector.broadcast %cst_73 : f32 to vector<8x128xf32>
    %276 = arith.subf %274, %275 : vector<8x128xf32>
    %cst_74 = arith.constant 8.000000e+00 : f32
    %277 = vector.broadcast %cst_74 : f32 to vector<8x128xf32>
    %278 = arith.mulf %277, %272 : vector<8x128xf32>
    %cst_75 = arith.constant 4.000000e+00 : f32
    %279 = vector.broadcast %cst_75 : f32 to vector<8x128xf32>
    %280 = arith.subf %278, %279 : vector<8x128xf32>
    %281 = vector.extract_strided_slice %38 {offsets = [104, 0], sizes = [8, 128], strides = [1, 1]} : vector<112x128xf32> to vector<8x128xf32>
    %cst_76 = arith.constant 0.000000e+00 : f32
    %282 = vector.broadcast %cst_76 : f32 to vector<8x128xf32>
    %283 = arith.maximumf %281, %282 : vector<8x128xf32>
    %284 = math.absf %281 : vector<8x128xf32>
    %cst_77 = arith.constant 0.000000e+00 : f32
    %285 = vector.broadcast %cst_77 : f32 to vector<8x128xf32>
    %286 = arith.subf %285, %284 : vector<8x128xf32>
    %287 = math.exp %286 : vector<8x128xf32>
    %cst_78 = arith.constant 1.000000e+00 : f32
    %288 = vector.broadcast %cst_78 : f32 to vector<8x128xf32>
    %289 = arith.addf %288, %287 : vector<8x128xf32>
    %290 = math.log %289 : vector<8x128xf32>
    %291 = arith.addf %283, %290 : vector<8x128xf32>
    %cst_79 = arith.constant 0.000000e+00 : f32
    %292 = vector.broadcast %cst_79 : f32 to vector<8x128xf32>
    %293 = arith.maximumf %291, %292 : vector<8x128xf32>
    %294 = math.absf %291 : vector<8x128xf32>
    %cst_80 = arith.constant 0.000000e+00 : f32
    %295 = vector.broadcast %cst_80 : f32 to vector<8x128xf32>
    %296 = arith.subf %295, %294 : vector<8x128xf32>
    %297 = math.exp %296 : vector<8x128xf32>
    %cst_81 = arith.constant 1.000000e+00 : f32
    %298 = vector.broadcast %cst_81 : f32 to vector<8x128xf32>
    %299 = arith.addf %298, %297 : vector<8x128xf32>
    %300 = math.log %299 : vector<8x128xf32>
    %301 = arith.addf %293, %300 : vector<8x128xf32>
    %cst_82 = arith.constant 1.000000e-03 : f32
    %302 = vector.broadcast %cst_82 : f32 to vector<8x128xf32>
    %303 = arith.addf %302, %301 : vector<8x128xf32>
    %304 = arith.cmpf oge, %148, %234 : vector<8x128xf32>
    %305 = arith.select %304, %234, %263 : vector<8x128xi1>, vector<8x128xf32>
    %306 = arith.select %304, %238, %264 : vector<8x128xi1>, vector<8x128xf32>
    %307 = arith.select %304, %261, %265 : vector<8x128xi1>, vector<8x128xf32>
    %308 = arith.subf %276, %234 : vector<8x128xf32>
    %309 = arith.select %304, %308, %267 : vector<8x128xi1>, vector<8x128xf32>
    %310 = arith.subf %280, %238 : vector<8x128xf32>
    %311 = arith.select %304, %310, %269 : vector<8x128xi1>, vector<8x128xf32>
    %312 = arith.select %304, %303, %270 : vector<8x128xi1>, vector<8x128xf32>
    %313 = arith.cmpf oge, %148, %276 : vector<8x128xf32>
    %314 = arith.select %313, %276, %305 : vector<8x128xi1>, vector<8x128xf32>
    %315 = arith.select %313, %280, %306 : vector<8x128xi1>, vector<8x128xf32>
    %316 = arith.select %313, %303, %307 : vector<8x128xi1>, vector<8x128xf32>
    %cst_83 = arith.constant 4.000000e+00 : f32
    %317 = vector.broadcast %cst_83 : f32 to vector<8x128xf32>
    %318 = arith.subf %317, %276 : vector<8x128xf32>
    %319 = arith.select %313, %318, %309 : vector<8x128xi1>, vector<8x128xf32>
    %cst_84 = arith.constant 4.000000e+00 : f32
    %320 = vector.broadcast %cst_84 : f32 to vector<8x128xf32>
    %321 = arith.subf %320, %280 : vector<8x128xf32>
    %322 = arith.select %313, %321, %311 : vector<8x128xi1>, vector<8x128xf32>
    %cst_85 = arith.constant 1.000000e+00 : f32
    %323 = vector.broadcast %cst_85 : f32 to vector<8x128xf32>
    %324 = arith.select %313, %323, %312 : vector<8x128xi1>, vector<8x128xf32>
    %cst_86 = arith.constant 1.000000e+00 : f32
    %325 = vector.broadcast %cst_86 : f32 to vector<8x128xf32>
    %326 = arith.divf %325, %319 : vector<8x128xf32>
    %327 = arith.mulf %322, %326 : vector<8x128xf32>
    %328 = arith.subf %148, %314 : vector<8x128xf32>
    %329 = arith.mulf %328, %326 : vector<8x128xf32>
    %cst_87 = arith.constant 1.000000e+00 : f32
    %330 = vector.broadcast %cst_87 : f32 to vector<8x128xf32>
    %331 = arith.subf %330, %329 : vector<8x128xf32>
    %332 = arith.mulf %329, %331 : vector<8x128xf32>
    %333 = arith.mulf %327, %329 : vector<8x128xf32>
    %334 = arith.mulf %333, %329 : vector<8x128xf32>
    %335 = arith.mulf %316, %332 : vector<8x128xf32>
    %336 = arith.addf %334, %335 : vector<8x128xf32>
    %337 = arith.mulf %322, %336 : vector<8x128xf32>
    %338 = arith.addf %316, %324 : vector<8x128xf32>
    %cst_88 = arith.constant 2.000000e+00 : f32
    %339 = vector.broadcast %cst_88 : f32 to vector<8x128xf32>
    %340 = arith.mulf %339, %327 : vector<8x128xf32>
    %341 = arith.subf %338, %340 : vector<8x128xf32>
    %342 = arith.mulf %341, %332 : vector<8x128xf32>
    %343 = arith.addf %327, %342 : vector<8x128xf32>
    %cst_89 = arith.constant 1.000000e+00 : f32
    %344 = vector.broadcast %cst_89 : f32 to vector<8x128xf32>
    %345 = arith.divf %344, %343 : vector<8x128xf32>
    %346 = arith.mulf %337, %345 : vector<8x128xf32>
    %347 = arith.addf %315, %346 : vector<8x128xf32>
    %348 = arith.mulf %327, %327 : vector<8x128xf32>
    %349 = arith.mulf %324, %329 : vector<8x128xf32>
    %350 = arith.mulf %349, %329 : vector<8x128xf32>
    %cst_90 = arith.constant 2.000000e+00 : f32
    %351 = vector.broadcast %cst_90 : f32 to vector<8x128xf32>
    %352 = arith.mulf %351, %327 : vector<8x128xf32>
    %353 = arith.mulf %352, %332 : vector<8x128xf32>
    %354 = arith.addf %350, %353 : vector<8x128xf32>
    %cst_91 = arith.constant 1.000000e+00 : f32
    %355 = vector.broadcast %cst_91 : f32 to vector<8x128xf32>
    %356 = arith.subf %355, %329 : vector<8x128xf32>
    %357 = arith.mulf %316, %356 : vector<8x128xf32>
    %cst_92 = arith.constant 1.000000e+00 : f32
    %358 = vector.broadcast %cst_92 : f32 to vector<8x128xf32>
    %359 = arith.subf %358, %329 : vector<8x128xf32>
    %360 = arith.mulf %357, %359 : vector<8x128xf32>
    %361 = arith.addf %354, %360 : vector<8x128xf32>
    %362 = arith.mulf %348, %361 : vector<8x128xf32>
    %363 = arith.mulf %345, %345 : vector<8x128xf32>
    %364 = arith.mulf %362, %363 : vector<8x128xf32>
    %365 = math.log %364 : vector<8x128xf32>
    %cst_93 = arith.constant -4.000000e+00 : f32
    %366 = vector.broadcast %cst_93 : f32 to vector<8x128xf32>
    %367 = arith.cmpf oge, %2, %366 : vector<8x128xf32>
    %cst_94 = arith.constant 4.000000e+00 : f32
    %368 = vector.broadcast %cst_94 : f32 to vector<8x128xf32>
    %369 = arith.cmpf ole, %2, %368 : vector<8x128xf32>
    %370 = arith.andi %367, %369 : vector<8x128xi1>
    %371 = arith.select %370, %347, %2 : vector<8x128xi1>, vector<8x128xf32>
    %cst_95 = arith.constant 0.000000e+00 : f32
    %372 = vector.broadcast %cst_95 : f32 to vector<8x128xf32>
    %373 = arith.select %370, %365, %372 : vector<8x128xi1>, vector<8x128xf32>
    %c0_96 = arith.constant 0 : index
    %c0_97 = arith.constant 0 : index
    %374 = vector.load %arg7[%c0_96, %c0_97] : memref<6x8xf32, #tpu.memory_space<vmem>>, vector<6x8xf32>
    %c0_98 = arith.constant 0 : index
    %c0_99 = arith.constant 0 : index
    %375 = vector.load %arg8[%c0_98, %c0_99] : memref<6x6xf32, #tpu.memory_space<vmem>>, vector<6x6xf32>
    %c0_100 = arith.constant 0 : index
    %c0_101 = arith.constant 0 : index
    %376 = vector.load %arg9[%c0_100, %c0_101] : memref<6x6xf32, #tpu.memory_space<vmem>>, vector<6x6xf32>
    %c0_102 = arith.constant 0 : index
    %c0_103 = arith.constant 0 : index
    %377 = vector.load %arg10[%c0_102, %c0_103] : memref<112x6xf32, #tpu.memory_space<vmem>>, vector<112x6xf32>
    %c0_104 = arith.constant 0 : index
    %c0_105 = arith.constant 0 : index
    %378 = vector.load %arg11[%c0_104, %c0_105] : memref<136x1xf32, #tpu.memory_space<vmem>>, vector<136x1xf32>
    %379 = vector.extract_strided_slice %378 {offsets = [0, 0], sizes = [6, 1], strides = [1, 1]} : vector<136x1xf32> to vector<6x1xf32>
    %380 = vector.extract_strided_slice %378 {offsets = [8, 0], sizes = [6, 1], strides = [1, 1]} : vector<136x1xf32> to vector<6x1xf32>
    %381 = vector.extract_strided_slice %378 {offsets = [16, 0], sizes = [6, 1], strides = [1, 1]} : vector<136x1xf32> to vector<6x1xf32>
    %382 = vector.extract_strided_slice %378 {offsets = [24, 0], sizes = [112, 1], strides = [1, 1]} : vector<136x1xf32> to vector<112x1xf32>
    %cst_106 = arith.constant dense<0.000000e+00> : vector<6x128xf32>
    %383 = tpu.matmul %374, %371, %cst_106 {dimension_numbers = #tpu.dot_dimension_numbers<[1], [0], [0], [1], [0, 0, 1, 1], [], []>} : vector<6x8xf32>, vector<8x128xf32>, vector<6x128xf32> -> vector<6x128xf32>
    %384 = vector.broadcast %379 : vector<6x1xf32> to vector<6x128xf32>
    %385 = arith.addf %383, %384 : vector<6x128xf32>
    %cst_107 = arith.constant 0.000000e+00 : f32
    %386 = vector.broadcast %cst_107 : f32 to vector<6x128xf32>
    %387 = arith.cmpf ogt, %385, %386 : vector<6x128xf32>
    %cst_108 = arith.constant 2.000000e-01 : f32
    %388 = vector.broadcast %cst_108 : f32 to vector<6x128xf32>
    %389 = arith.mulf %388, %385 : vector<6x128xf32>
    %390 = arith.select %387, %385, %389 : vector<6x128xi1>, vector<6x128xf32>
    %cst_109 = arith.constant dense<0.000000e+00> : vector<6x128xf32>
    %391 = tpu.matmul %375, %390, %cst_109 {dimension_numbers = #tpu.dot_dimension_numbers<[1], [0], [0], [1], [0, 0, 1, 1], [], []>} : vector<6x6xf32>, vector<6x128xf32>, vector<6x128xf32> -> vector<6x128xf32>
    %392 = vector.broadcast %380 : vector<6x1xf32> to vector<6x128xf32>
    %393 = arith.addf %391, %392 : vector<6x128xf32>
    %cst_110 = arith.constant 0.000000e+00 : f32
    %394 = vector.broadcast %cst_110 : f32 to vector<6x128xf32>
    %395 = arith.cmpf ogt, %393, %394 : vector<6x128xf32>
    %cst_111 = arith.constant 2.000000e-01 : f32
    %396 = vector.broadcast %cst_111 : f32 to vector<6x128xf32>
    %397 = arith.mulf %396, %393 : vector<6x128xf32>
    %398 = arith.select %395, %393, %397 : vector<6x128xi1>, vector<6x128xf32>
    %cst_112 = arith.constant dense<0.000000e+00> : vector<6x128xf32>
    %399 = tpu.matmul %376, %398, %cst_112 {dimension_numbers = #tpu.dot_dimension_numbers<[1], [0], [0], [1], [0, 0, 1, 1], [], []>} : vector<6x6xf32>, vector<6x128xf32>, vector<6x128xf32> -> vector<6x128xf32>
    %400 = vector.broadcast %381 : vector<6x1xf32> to vector<6x128xf32>
    %401 = arith.addf %399, %400 : vector<6x128xf32>
    %cst_113 = arith.constant 0.000000e+00 : f32
    %402 = vector.broadcast %cst_113 : f32 to vector<6x128xf32>
    %403 = arith.cmpf ogt, %401, %402 : vector<6x128xf32>
    %cst_114 = arith.constant 2.000000e-01 : f32
    %404 = vector.broadcast %cst_114 : f32 to vector<6x128xf32>
    %405 = arith.mulf %404, %401 : vector<6x128xf32>
    %406 = arith.select %403, %401, %405 : vector<6x128xi1>, vector<6x128xf32>
    %cst_115 = arith.constant dense<0.000000e+00> : vector<112x128xf32>
    %407 = tpu.matmul %377, %406, %cst_115 {dimension_numbers = #tpu.dot_dimension_numbers<[1], [0], [0], [1], [0, 0, 1, 1], [], []>} : vector<112x6xf32>, vector<6x128xf32>, vector<112x128xf32> -> vector<112x128xf32>
    %408 = vector.broadcast %382 : vector<112x1xf32> to vector<112x128xf32>
    %409 = arith.addf %407, %408 : vector<112x128xf32>
    %410 = vector.extract_strided_slice %409 {offsets = [0, 0], sizes = [8, 128], strides = [1, 1]} : vector<112x128xf32> to vector<8x128xf32>
    %411 = vector.extract_strided_slice %409 {offsets = [8, 0], sizes = [8, 128], strides = [1, 1]} : vector<112x128xf32> to vector<8x128xf32>
    %412 = vector.extract_strided_slice %409 {offsets = [16, 0], sizes = [8, 128], strides = [1, 1]} : vector<112x128xf32> to vector<8x128xf32>
    %413 = vector.extract_strided_slice %409 {offsets = [24, 0], sizes = [8, 128], strides = [1, 1]} : vector<112x128xf32> to vector<8x128xf32>
    %414 = vector.extract_strided_slice %409 {offsets = [32, 0], sizes = [8, 128], strides = [1, 1]} : vector<112x128xf32> to vector<8x128xf32>
    %415 = arith.maximumf %410, %411 : vector<8x128xf32>
    %416 = arith.maximumf %415, %412 : vector<8x128xf32>
    %417 = arith.maximumf %416, %413 : vector<8x128xf32>
    %418 = arith.maximumf %417, %414 : vector<8x128xf32>
    %419 = arith.subf %410, %418 : vector<8x128xf32>
    %420 = math.exp %419 : vector<8x128xf32>
    %421 = arith.subf %411, %418 : vector<8x128xf32>
    %422 = math.exp %421 : vector<8x128xf32>
    %423 = arith.subf %412, %418 : vector<8x128xf32>
    %424 = math.exp %423 : vector<8x128xf32>
    %425 = arith.subf %413, %418 : vector<8x128xf32>
    %426 = math.exp %425 : vector<8x128xf32>
    %427 = arith.subf %414, %418 : vector<8x128xf32>
    %428 = math.exp %427 : vector<8x128xf32>
    %429 = arith.addf %420, %422 : vector<8x128xf32>
    %430 = arith.addf %429, %424 : vector<8x128xf32>
    %431 = arith.addf %430, %426 : vector<8x128xf32>
    %432 = arith.addf %431, %428 : vector<8x128xf32>
    %cst_116 = arith.constant 8.000000e+00 : f32
    %433 = vector.broadcast %cst_116 : f32 to vector<8x128xf32>
    %434 = arith.divf %433, %432 : vector<8x128xf32>
    %435 = arith.mulf %420, %434 : vector<8x128xf32>
    %436 = arith.mulf %422, %434 : vector<8x128xf32>
    %437 = arith.mulf %424, %434 : vector<8x128xf32>
    %438 = arith.mulf %426, %434 : vector<8x128xf32>
    %439 = arith.mulf %428, %434 : vector<8x128xf32>
    %440 = math.exp %435 : vector<8x128xf32>
    %441 = math.exp %436 : vector<8x128xf32>
    %442 = math.exp %437 : vector<8x128xf32>
    %443 = math.exp %438 : vector<8x128xf32>
    %444 = math.exp %439 : vector<8x128xf32>
    %445 = arith.addf %440, %441 : vector<8x128xf32>
    %446 = arith.addf %445, %442 : vector<8x128xf32>
    %447 = arith.addf %446, %443 : vector<8x128xf32>
    %448 = arith.addf %447, %444 : vector<8x128xf32>
    %cst_117 = arith.constant 9.950000e-01 : f32
    %449 = vector.broadcast %cst_117 : f32 to vector<8x128xf32>
    %450 = arith.divf %449, %448 : vector<8x128xf32>
    %451 = arith.mulf %440, %450 : vector<8x128xf32>
    %cst_118 = arith.constant 1.000000e-03 : f32
    %452 = vector.broadcast %cst_118 : f32 to vector<8x128xf32>
    %453 = arith.addf %452, %451 : vector<8x128xf32>
    %454 = arith.mulf %441, %450 : vector<8x128xf32>
    %cst_119 = arith.constant 1.000000e-03 : f32
    %455 = vector.broadcast %cst_119 : f32 to vector<8x128xf32>
    %456 = arith.addf %455, %454 : vector<8x128xf32>
    %457 = arith.mulf %442, %450 : vector<8x128xf32>
    %cst_120 = arith.constant 1.000000e-03 : f32
    %458 = vector.broadcast %cst_120 : f32 to vector<8x128xf32>
    %459 = arith.addf %458, %457 : vector<8x128xf32>
    %460 = arith.mulf %443, %450 : vector<8x128xf32>
    %cst_121 = arith.constant 1.000000e-03 : f32
    %461 = vector.broadcast %cst_121 : f32 to vector<8x128xf32>
    %462 = arith.addf %461, %460 : vector<8x128xf32>
    %463 = vector.extract_strided_slice %409 {offsets = [40, 0], sizes = [8, 128], strides = [1, 1]} : vector<112x128xf32> to vector<8x128xf32>
    %464 = vector.extract_strided_slice %409 {offsets = [48, 0], sizes = [8, 128], strides = [1, 1]} : vector<112x128xf32> to vector<8x128xf32>
    %465 = vector.extract_strided_slice %409 {offsets = [56, 0], sizes = [8, 128], strides = [1, 1]} : vector<112x128xf32> to vector<8x128xf32>
    %466 = vector.extract_strided_slice %409 {offsets = [64, 0], sizes = [8, 128], strides = [1, 1]} : vector<112x128xf32> to vector<8x128xf32>
    %467 = vector.extract_strided_slice %409 {offsets = [72, 0], sizes = [8, 128], strides = [1, 1]} : vector<112x128xf32> to vector<8x128xf32>
    %468 = arith.maximumf %463, %464 : vector<8x128xf32>
    %469 = arith.maximumf %468, %465 : vector<8x128xf32>
    %470 = arith.maximumf %469, %466 : vector<8x128xf32>
    %471 = arith.maximumf %470, %467 : vector<8x128xf32>
    %472 = arith.subf %463, %471 : vector<8x128xf32>
    %473 = math.exp %472 : vector<8x128xf32>
    %474 = arith.subf %464, %471 : vector<8x128xf32>
    %475 = math.exp %474 : vector<8x128xf32>
    %476 = arith.subf %465, %471 : vector<8x128xf32>
    %477 = math.exp %476 : vector<8x128xf32>
    %478 = arith.subf %466, %471 : vector<8x128xf32>
    %479 = math.exp %478 : vector<8x128xf32>
    %480 = arith.subf %467, %471 : vector<8x128xf32>
    %481 = math.exp %480 : vector<8x128xf32>
    %482 = arith.addf %473, %475 : vector<8x128xf32>
    %483 = arith.addf %482, %477 : vector<8x128xf32>
    %484 = arith.addf %483, %479 : vector<8x128xf32>
    %485 = arith.addf %484, %481 : vector<8x128xf32>
    %cst_122 = arith.constant 8.000000e+00 : f32
    %486 = vector.broadcast %cst_122 : f32 to vector<8x128xf32>
    %487 = arith.divf %486, %485 : vector<8x128xf32>
    %488 = arith.mulf %473, %487 : vector<8x128xf32>
    %489 = arith.mulf %475, %487 : vector<8x128xf32>
    %490 = arith.mulf %477, %487 : vector<8x128xf32>
    %491 = arith.mulf %479, %487 : vector<8x128xf32>
    %492 = arith.mulf %481, %487 : vector<8x128xf32>
    %493 = math.exp %488 : vector<8x128xf32>
    %494 = math.exp %489 : vector<8x128xf32>
    %495 = math.exp %490 : vector<8x128xf32>
    %496 = math.exp %491 : vector<8x128xf32>
    %497 = math.exp %492 : vector<8x128xf32>
    %498 = arith.addf %493, %494 : vector<8x128xf32>
    %499 = arith.addf %498, %495 : vector<8x128xf32>
    %500 = arith.addf %499, %496 : vector<8x128xf32>
    %501 = arith.addf %500, %497 : vector<8x128xf32>
    %cst_123 = arith.constant 9.950000e-01 : f32
    %502 = vector.broadcast %cst_123 : f32 to vector<8x128xf32>
    %503 = arith.divf %502, %501 : vector<8x128xf32>
    %504 = arith.mulf %493, %503 : vector<8x128xf32>
    %cst_124 = arith.constant 1.000000e-03 : f32
    %505 = vector.broadcast %cst_124 : f32 to vector<8x128xf32>
    %506 = arith.addf %505, %504 : vector<8x128xf32>
    %507 = arith.mulf %494, %503 : vector<8x128xf32>
    %cst_125 = arith.constant 1.000000e-03 : f32
    %508 = vector.broadcast %cst_125 : f32 to vector<8x128xf32>
    %509 = arith.addf %508, %507 : vector<8x128xf32>
    %510 = arith.mulf %495, %503 : vector<8x128xf32>
    %cst_126 = arith.constant 1.000000e-03 : f32
    %511 = vector.broadcast %cst_126 : f32 to vector<8x128xf32>
    %512 = arith.addf %511, %510 : vector<8x128xf32>
    %513 = arith.mulf %496, %503 : vector<8x128xf32>
    %cst_127 = arith.constant 1.000000e-03 : f32
    %514 = vector.broadcast %cst_127 : f32 to vector<8x128xf32>
    %515 = arith.addf %514, %513 : vector<8x128xf32>
    %cst_128 = arith.constant -4.000000e+00 : f32
    %cst_129 = arith.constant 4.000000e+00 : f32
    %516 = vector.broadcast %cst_128 : f32 to vector<8x128xf32>
    %517 = arith.maximumf %516, %1 : vector<8x128xf32>
    %518 = vector.broadcast %cst_129 : f32 to vector<8x128xf32>
    %519 = arith.minimumf %518, %517 : vector<8x128xf32>
    %cst_130 = arith.constant 8.000000e+00 : f32
    %520 = vector.broadcast %cst_130 : f32 to vector<8x128xf32>
    %521 = arith.mulf %520, %453 : vector<8x128xf32>
    %cst_131 = arith.constant 4.000000e+00 : f32
    %522 = vector.broadcast %cst_131 : f32 to vector<8x128xf32>
    %523 = arith.subf %521, %522 : vector<8x128xf32>
    %cst_132 = arith.constant 8.000000e+00 : f32
    %524 = vector.broadcast %cst_132 : f32 to vector<8x128xf32>
    %525 = arith.mulf %524, %506 : vector<8x128xf32>
    %cst_133 = arith.constant 4.000000e+00 : f32
    %526 = vector.broadcast %cst_133 : f32 to vector<8x128xf32>
    %527 = arith.subf %525, %526 : vector<8x128xf32>
    %528 = vector.extract_strided_slice %409 {offsets = [80, 0], sizes = [8, 128], strides = [1, 1]} : vector<112x128xf32> to vector<8x128xf32>
    %cst_134 = arith.constant 0.000000e+00 : f32
    %529 = vector.broadcast %cst_134 : f32 to vector<8x128xf32>
    %530 = arith.maximumf %528, %529 : vector<8x128xf32>
    %531 = math.absf %528 : vector<8x128xf32>
    %cst_135 = arith.constant 0.000000e+00 : f32
    %532 = vector.broadcast %cst_135 : f32 to vector<8x128xf32>
    %533 = arith.subf %532, %531 : vector<8x128xf32>
    %534 = math.exp %533 : vector<8x128xf32>
    %cst_136 = arith.constant 1.000000e+00 : f32
    %535 = vector.broadcast %cst_136 : f32 to vector<8x128xf32>
    %536 = arith.addf %535, %534 : vector<8x128xf32>
    %537 = math.log %536 : vector<8x128xf32>
    %538 = arith.addf %530, %537 : vector<8x128xf32>
    %cst_137 = arith.constant 0.000000e+00 : f32
    %539 = vector.broadcast %cst_137 : f32 to vector<8x128xf32>
    %540 = arith.maximumf %538, %539 : vector<8x128xf32>
    %541 = math.absf %538 : vector<8x128xf32>
    %cst_138 = arith.constant 0.000000e+00 : f32
    %542 = vector.broadcast %cst_138 : f32 to vector<8x128xf32>
    %543 = arith.subf %542, %541 : vector<8x128xf32>
    %544 = math.exp %543 : vector<8x128xf32>
    %cst_139 = arith.constant 1.000000e+00 : f32
    %545 = vector.broadcast %cst_139 : f32 to vector<8x128xf32>
    %546 = arith.addf %545, %544 : vector<8x128xf32>
    %547 = math.log %546 : vector<8x128xf32>
    %548 = arith.addf %540, %547 : vector<8x128xf32>
    %cst_140 = arith.constant 1.000000e-03 : f32
    %549 = vector.broadcast %cst_140 : f32 to vector<8x128xf32>
    %550 = arith.addf %549, %548 : vector<8x128xf32>
    %cst_141 = arith.constant 4.000000e+00 : f32
    %551 = vector.broadcast %cst_141 : f32 to vector<8x128xf32>
    %552 = arith.addf %523, %551 : vector<8x128xf32>
    %cst_142 = arith.constant 4.000000e+00 : f32
    %553 = vector.broadcast %cst_142 : f32 to vector<8x128xf32>
    %554 = arith.addf %527, %553 : vector<8x128xf32>
    %555 = arith.addf %453, %456 : vector<8x128xf32>
    %556 = arith.addf %506, %509 : vector<8x128xf32>
    %cst_143 = arith.constant 8.000000e+00 : f32
    %557 = vector.broadcast %cst_143 : f32 to vector<8x128xf32>
    %558 = arith.mulf %557, %555 : vector<8x128xf32>
    %cst_144 = arith.constant 4.000000e+00 : f32
    %559 = vector.broadcast %cst_144 : f32 to vector<8x128xf32>
    %560 = arith.subf %558, %559 : vector<8x128xf32>
    %cst_145 = arith.constant 8.000000e+00 : f32
    %561 = vector.broadcast %cst_145 : f32 to vector<8x128xf32>
    %562 = arith.mulf %561, %556 : vector<8x128xf32>
    %cst_146 = arith.constant 4.000000e+00 : f32
    %563 = vector.broadcast %cst_146 : f32 to vector<8x128xf32>
    %564 = arith.subf %562, %563 : vector<8x128xf32>
    %565 = vector.extract_strided_slice %409 {offsets = [88, 0], sizes = [8, 128], strides = [1, 1]} : vector<112x128xf32> to vector<8x128xf32>
    %cst_147 = arith.constant 0.000000e+00 : f32
    %566 = vector.broadcast %cst_147 : f32 to vector<8x128xf32>
    %567 = arith.maximumf %565, %566 : vector<8x128xf32>
    %568 = math.absf %565 : vector<8x128xf32>
    %cst_148 = arith.constant 0.000000e+00 : f32
    %569 = vector.broadcast %cst_148 : f32 to vector<8x128xf32>
    %570 = arith.subf %569, %568 : vector<8x128xf32>
    %571 = math.exp %570 : vector<8x128xf32>
    %cst_149 = arith.constant 1.000000e+00 : f32
    %572 = vector.broadcast %cst_149 : f32 to vector<8x128xf32>
    %573 = arith.addf %572, %571 : vector<8x128xf32>
    %574 = math.log %573 : vector<8x128xf32>
    %575 = arith.addf %567, %574 : vector<8x128xf32>
    %cst_150 = arith.constant 0.000000e+00 : f32
    %576 = vector.broadcast %cst_150 : f32 to vector<8x128xf32>
    %577 = arith.maximumf %575, %576 : vector<8x128xf32>
    %578 = math.absf %575 : vector<8x128xf32>
    %cst_151 = arith.constant 0.000000e+00 : f32
    %579 = vector.broadcast %cst_151 : f32 to vector<8x128xf32>
    %580 = arith.subf %579, %578 : vector<8x128xf32>
    %581 = math.exp %580 : vector<8x128xf32>
    %cst_152 = arith.constant 1.000000e+00 : f32
    %582 = vector.broadcast %cst_152 : f32 to vector<8x128xf32>
    %583 = arith.addf %582, %581 : vector<8x128xf32>
    %584 = math.log %583 : vector<8x128xf32>
    %585 = arith.addf %577, %584 : vector<8x128xf32>
    %cst_153 = arith.constant 1.000000e-03 : f32
    %586 = vector.broadcast %cst_153 : f32 to vector<8x128xf32>
    %587 = arith.addf %586, %585 : vector<8x128xf32>
    %588 = arith.cmpf oge, %519, %523 : vector<8x128xf32>
    %cst_154 = arith.constant -4.000000e+00 : f32
    %589 = vector.broadcast %cst_154 : f32 to vector<8x128xf32>
    %590 = arith.select %588, %523, %589 : vector<8x128xi1>, vector<8x128xf32>
    %cst_155 = arith.constant -4.000000e+00 : f32
    %591 = vector.broadcast %cst_155 : f32 to vector<8x128xf32>
    %592 = arith.select %588, %527, %591 : vector<8x128xi1>, vector<8x128xf32>
    %cst_156 = arith.constant 1.000000e+00 : f32
    %593 = vector.broadcast %cst_156 : f32 to vector<8x128xf32>
    %594 = arith.select %588, %550, %593 : vector<8x128xi1>, vector<8x128xf32>
    %595 = arith.subf %560, %523 : vector<8x128xf32>
    %596 = arith.select %588, %595, %552 : vector<8x128xi1>, vector<8x128xf32>
    %597 = arith.subf %564, %527 : vector<8x128xf32>
    %598 = arith.select %588, %597, %554 : vector<8x128xi1>, vector<8x128xf32>
    %599 = arith.select %588, %587, %550 : vector<8x128xi1>, vector<8x128xf32>
    %600 = arith.addf %555, %459 : vector<8x128xf32>
    %601 = arith.addf %556, %512 : vector<8x128xf32>
    %cst_157 = arith.constant 8.000000e+00 : f32
    %602 = vector.broadcast %cst_157 : f32 to vector<8x128xf32>
    %603 = arith.mulf %602, %600 : vector<8x128xf32>
    %cst_158 = arith.constant 4.000000e+00 : f32
    %604 = vector.broadcast %cst_158 : f32 to vector<8x128xf32>
    %605 = arith.subf %603, %604 : vector<8x128xf32>
    %cst_159 = arith.constant 8.000000e+00 : f32
    %606 = vector.broadcast %cst_159 : f32 to vector<8x128xf32>
    %607 = arith.mulf %606, %601 : vector<8x128xf32>
    %cst_160 = arith.constant 4.000000e+00 : f32
    %608 = vector.broadcast %cst_160 : f32 to vector<8x128xf32>
    %609 = arith.subf %607, %608 : vector<8x128xf32>
    %610 = vector.extract_strided_slice %409 {offsets = [96, 0], sizes = [8, 128], strides = [1, 1]} : vector<112x128xf32> to vector<8x128xf32>
    %cst_161 = arith.constant 0.000000e+00 : f32
    %611 = vector.broadcast %cst_161 : f32 to vector<8x128xf32>
    %612 = arith.maximumf %610, %611 : vector<8x128xf32>
    %613 = math.absf %610 : vector<8x128xf32>
    %cst_162 = arith.constant 0.000000e+00 : f32
    %614 = vector.broadcast %cst_162 : f32 to vector<8x128xf32>
    %615 = arith.subf %614, %613 : vector<8x128xf32>
    %616 = math.exp %615 : vector<8x128xf32>
    %cst_163 = arith.constant 1.000000e+00 : f32
    %617 = vector.broadcast %cst_163 : f32 to vector<8x128xf32>
    %618 = arith.addf %617, %616 : vector<8x128xf32>
    %619 = math.log %618 : vector<8x128xf32>
    %620 = arith.addf %612, %619 : vector<8x128xf32>
    %cst_164 = arith.constant 0.000000e+00 : f32
    %621 = vector.broadcast %cst_164 : f32 to vector<8x128xf32>
    %622 = arith.maximumf %620, %621 : vector<8x128xf32>
    %623 = math.absf %620 : vector<8x128xf32>
    %cst_165 = arith.constant 0.000000e+00 : f32
    %624 = vector.broadcast %cst_165 : f32 to vector<8x128xf32>
    %625 = arith.subf %624, %623 : vector<8x128xf32>
    %626 = math.exp %625 : vector<8x128xf32>
    %cst_166 = arith.constant 1.000000e+00 : f32
    %627 = vector.broadcast %cst_166 : f32 to vector<8x128xf32>
    %628 = arith.addf %627, %626 : vector<8x128xf32>
    %629 = math.log %628 : vector<8x128xf32>
    %630 = arith.addf %622, %629 : vector<8x128xf32>
    %cst_167 = arith.constant 1.000000e-03 : f32
    %631 = vector.broadcast %cst_167 : f32 to vector<8x128xf32>
    %632 = arith.addf %631, %630 : vector<8x128xf32>
    %633 = arith.cmpf oge, %519, %560 : vector<8x128xf32>
    %634 = arith.select %633, %560, %590 : vector<8x128xi1>, vector<8x128xf32>
    %635 = arith.select %633, %564, %592 : vector<8x128xi1>, vector<8x128xf32>
    %636 = arith.select %633, %587, %594 : vector<8x128xi1>, vector<8x128xf32>
    %637 = arith.subf %605, %560 : vector<8x128xf32>
    %638 = arith.select %633, %637, %596 : vector<8x128xi1>, vector<8x128xf32>
    %639 = arith.subf %609, %564 : vector<8x128xf32>
    %640 = arith.select %633, %639, %598 : vector<8x128xi1>, vector<8x128xf32>
    %641 = arith.select %633, %632, %599 : vector<8x128xi1>, vector<8x128xf32>
    %642 = arith.addf %600, %462 : vector<8x128xf32>
    %643 = arith.addf %601, %515 : vector<8x128xf32>
    %cst_168 = arith.constant 8.000000e+00 : f32
    %644 = vector.broadcast %cst_168 : f32 to vector<8x128xf32>
    %645 = arith.mulf %644, %642 : vector<8x128xf32>
    %cst_169 = arith.constant 4.000000e+00 : f32
    %646 = vector.broadcast %cst_169 : f32 to vector<8x128xf32>
    %647 = arith.subf %645, %646 : vector<8x128xf32>
    %cst_170 = arith.constant 8.000000e+00 : f32
    %648 = vector.broadcast %cst_170 : f32 to vector<8x128xf32>
    %649 = arith.mulf %648, %643 : vector<8x128xf32>
    %cst_171 = arith.constant 4.000000e+00 : f32
    %650 = vector.broadcast %cst_171 : f32 to vector<8x128xf32>
    %651 = arith.subf %649, %650 : vector<8x128xf32>
    %652 = vector.extract_strided_slice %409 {offsets = [104, 0], sizes = [8, 128], strides = [1, 1]} : vector<112x128xf32> to vector<8x128xf32>
    %cst_172 = arith.constant 0.000000e+00 : f32
    %653 = vector.broadcast %cst_172 : f32 to vector<8x128xf32>
    %654 = arith.maximumf %652, %653 : vector<8x128xf32>
    %655 = math.absf %652 : vector<8x128xf32>
    %cst_173 = arith.constant 0.000000e+00 : f32
    %656 = vector.broadcast %cst_173 : f32 to vector<8x128xf32>
    %657 = arith.subf %656, %655 : vector<8x128xf32>
    %658 = math.exp %657 : vector<8x128xf32>
    %cst_174 = arith.constant 1.000000e+00 : f32
    %659 = vector.broadcast %cst_174 : f32 to vector<8x128xf32>
    %660 = arith.addf %659, %658 : vector<8x128xf32>
    %661 = math.log %660 : vector<8x128xf32>
    %662 = arith.addf %654, %661 : vector<8x128xf32>
    %cst_175 = arith.constant 0.000000e+00 : f32
    %663 = vector.broadcast %cst_175 : f32 to vector<8x128xf32>
    %664 = arith.maximumf %662, %663 : vector<8x128xf32>
    %665 = math.absf %662 : vector<8x128xf32>
    %cst_176 = arith.constant 0.000000e+00 : f32
    %666 = vector.broadcast %cst_176 : f32 to vector<8x128xf32>
    %667 = arith.subf %666, %665 : vector<8x128xf32>
    %668 = math.exp %667 : vector<8x128xf32>
    %cst_177 = arith.constant 1.000000e+00 : f32
    %669 = vector.broadcast %cst_177 : f32 to vector<8x128xf32>
    %670 = arith.addf %669, %668 : vector<8x128xf32>
    %671 = math.log %670 : vector<8x128xf32>
    %672 = arith.addf %664, %671 : vector<8x128xf32>
    %cst_178 = arith.constant 1.000000e-03 : f32
    %673 = vector.broadcast %cst_178 : f32 to vector<8x128xf32>
    %674 = arith.addf %673, %672 : vector<8x128xf32>
    %675 = arith.cmpf oge, %519, %605 : vector<8x128xf32>
    %676 = arith.select %675, %605, %634 : vector<8x128xi1>, vector<8x128xf32>
    %677 = arith.select %675, %609, %635 : vector<8x128xi1>, vector<8x128xf32>
    %678 = arith.select %675, %632, %636 : vector<8x128xi1>, vector<8x128xf32>
    %679 = arith.subf %647, %605 : vector<8x128xf32>
    %680 = arith.select %675, %679, %638 : vector<8x128xi1>, vector<8x128xf32>
    %681 = arith.subf %651, %609 : vector<8x128xf32>
    %682 = arith.select %675, %681, %640 : vector<8x128xi1>, vector<8x128xf32>
    %683 = arith.select %675, %674, %641 : vector<8x128xi1>, vector<8x128xf32>
    %684 = arith.cmpf oge, %519, %647 : vector<8x128xf32>
    %685 = arith.select %684, %647, %676 : vector<8x128xi1>, vector<8x128xf32>
    %686 = arith.select %684, %651, %677 : vector<8x128xi1>, vector<8x128xf32>
    %687 = arith.select %684, %674, %678 : vector<8x128xi1>, vector<8x128xf32>
    %cst_179 = arith.constant 4.000000e+00 : f32
    %688 = vector.broadcast %cst_179 : f32 to vector<8x128xf32>
    %689 = arith.subf %688, %647 : vector<8x128xf32>
    %690 = arith.select %684, %689, %680 : vector<8x128xi1>, vector<8x128xf32>
    %cst_180 = arith.constant 4.000000e+00 : f32
    %691 = vector.broadcast %cst_180 : f32 to vector<8x128xf32>
    %692 = arith.subf %691, %651 : vector<8x128xf32>
    %693 = arith.select %684, %692, %682 : vector<8x128xi1>, vector<8x128xf32>
    %cst_181 = arith.constant 1.000000e+00 : f32
    %694 = vector.broadcast %cst_181 : f32 to vector<8x128xf32>
    %695 = arith.select %684, %694, %683 : vector<8x128xi1>, vector<8x128xf32>
    %cst_182 = arith.constant 1.000000e+00 : f32
    %696 = vector.broadcast %cst_182 : f32 to vector<8x128xf32>
    %697 = arith.divf %696, %690 : vector<8x128xf32>
    %698 = arith.mulf %693, %697 : vector<8x128xf32>
    %699 = arith.subf %519, %685 : vector<8x128xf32>
    %700 = arith.mulf %699, %697 : vector<8x128xf32>
    %cst_183 = arith.constant 1.000000e+00 : f32
    %701 = vector.broadcast %cst_183 : f32 to vector<8x128xf32>
    %702 = arith.subf %701, %700 : vector<8x128xf32>
    %703 = arith.mulf %700, %702 : vector<8x128xf32>
    %704 = arith.mulf %698, %700 : vector<8x128xf32>
    %705 = arith.mulf %704, %700 : vector<8x128xf32>
    %706 = arith.mulf %687, %703 : vector<8x128xf32>
    %707 = arith.addf %705, %706 : vector<8x128xf32>
    %708 = arith.mulf %693, %707 : vector<8x128xf32>
    %709 = arith.addf %687, %695 : vector<8x128xf32>
    %cst_184 = arith.constant 2.000000e+00 : f32
    %710 = vector.broadcast %cst_184 : f32 to vector<8x128xf32>
    %711 = arith.mulf %710, %698 : vector<8x128xf32>
    %712 = arith.subf %709, %711 : vector<8x128xf32>
    %713 = arith.mulf %712, %703 : vector<8x128xf32>
    %714 = arith.addf %698, %713 : vector<8x128xf32>
    %cst_185 = arith.constant 1.000000e+00 : f32
    %715 = vector.broadcast %cst_185 : f32 to vector<8x128xf32>
    %716 = arith.divf %715, %714 : vector<8x128xf32>
    %717 = arith.mulf %708, %716 : vector<8x128xf32>
    %718 = arith.addf %686, %717 : vector<8x128xf32>
    %719 = arith.mulf %698, %698 : vector<8x128xf32>
    %720 = arith.mulf %695, %700 : vector<8x128xf32>
    %721 = arith.mulf %720, %700 : vector<8x128xf32>
    %cst_186 = arith.constant 2.000000e+00 : f32
    %722 = vector.broadcast %cst_186 : f32 to vector<8x128xf32>
    %723 = arith.mulf %722, %698 : vector<8x128xf32>
    %724 = arith.mulf %723, %703 : vector<8x128xf32>
    %725 = arith.addf %721, %724 : vector<8x128xf32>
    %cst_187 = arith.constant 1.000000e+00 : f32
    %726 = vector.broadcast %cst_187 : f32 to vector<8x128xf32>
    %727 = arith.subf %726, %700 : vector<8x128xf32>
    %728 = arith.mulf %687, %727 : vector<8x128xf32>
    %cst_188 = arith.constant 1.000000e+00 : f32
    %729 = vector.broadcast %cst_188 : f32 to vector<8x128xf32>
    %730 = arith.subf %729, %700 : vector<8x128xf32>
    %731 = arith.mulf %728, %730 : vector<8x128xf32>
    %732 = arith.addf %725, %731 : vector<8x128xf32>
    %733 = arith.mulf %719, %732 : vector<8x128xf32>
    %734 = arith.mulf %716, %716 : vector<8x128xf32>
    %735 = arith.mulf %733, %734 : vector<8x128xf32>
    %736 = math.log %735 : vector<8x128xf32>
    %cst_189 = arith.constant -4.000000e+00 : f32
    %737 = vector.broadcast %cst_189 : f32 to vector<8x128xf32>
    %738 = arith.cmpf oge, %1, %737 : vector<8x128xf32>
    %cst_190 = arith.constant 4.000000e+00 : f32
    %739 = vector.broadcast %cst_190 : f32 to vector<8x128xf32>
    %740 = arith.cmpf ole, %1, %739 : vector<8x128xf32>
    %741 = arith.andi %738, %740 : vector<8x128xi1>
    %742 = arith.select %741, %718, %1 : vector<8x128xi1>, vector<8x128xf32>
    %cst_191 = arith.constant 0.000000e+00 : f32
    %743 = vector.broadcast %cst_191 : f32 to vector<8x128xf32>
    %744 = arith.select %741, %736, %743 : vector<8x128xi1>, vector<8x128xf32>
    %c0_192 = arith.constant 0 : index
    %c0_193 = arith.constant 0 : index
    %745 = vector.load %arg12[%c0_192, %c0_193] : memref<16x128xf32, #tpu.memory_space<vmem>>, vector<8x128xf32>
    tpu.vector_store %arg12[%c0_192, %c0_193], %742 {strides = array<i32>} : memref<16x128xf32, #tpu.memory_space<vmem>>, vector<8x128xf32>,
    %c8 = arith.constant 8 : index
    %c0_194 = arith.constant 0 : index
    %746 = vector.load %arg12[%c8, %c0_194] : memref<16x128xf32, #tpu.memory_space<vmem>>, vector<8x128xf32>
    tpu.vector_store %arg12[%c8, %c0_194], %371 {strides = array<i32>} : memref<16x128xf32, #tpu.memory_space<vmem>>, vector<8x128xf32>,
    %747 = arith.addf %373, %744 : vector<8x128xf32>
    %748 = tpu.iota {dimensions = array<i32: 0>} : vector<8x128xi32>
    %c4_i32 = arith.constant 4 : i32
    %749 = vector.broadcast %c4_i32 : i32 to vector<8x128xi32>
    %750 = arith.cmpi slt, %748, %749 : vector<8x128xi32>
    %cst_195 = arith.constant 0.000000e+00 : f32
    %751 = vector.broadcast %cst_195 : f32 to vector<8x128xf32>
    %752 = arith.select %750, %747, %751 : vector<8x128xi1>, vector<8x128xf32>
    %cst_196 = arith.constant dense<0.000000e+00> : vector<128xf32>
    %753 = vector.multi_reduction <add>, %752, %cst_196 [0] : vector<8x128xf32> to vector<128xf32>
    %754 = vector.shape_cast %753 : vector<128xf32> to vector<1x128xf32>
    %c0_197 = arith.constant 0 : index
    %c0_198 = arith.constant 0 : index
    %755 = vector.load %arg13[%c0_197, %c0_198] : memref<1x128xf32, #tpu.memory_space<vmem>>, vector<1x128xf32>
    tpu.vector_store %arg13[%c0_197, %c0_198], %754 {strides = array<i32>} : memref<1x128xf32, #tpu.memory_space<vmem>>, vector<1x128xf32>,
    return
  }
  func.func @transform_0(%arg0: i32) -> (i32, i32) {
    %c0_i32 = arith.constant 0 : i32
    %c0_i32_0 = arith.constant 0 : i32
    return %c0_i32, %arg0 : i32, i32
  }
  func.func @transform_1(%arg0: i32) -> (i32, i32) {
    %c0_i32 = arith.constant 0 : i32
    %c0_i32_0 = arith.constant 0 : i32
    %c0_i32_1 = arith.constant 0 : i32
    return %c0_i32, %c0_i32_0 : i32, i32
  }
  func.func @transform_2(%arg0: i32) -> (i32, i32) {
    %c0_i32 = arith.constant 0 : i32
    %c0_i32_0 = arith.constant 0 : i32
    %c0_i32_1 = arith.constant 0 : i32
    return %c0_i32, %c0_i32_0 : i32, i32
  }
  func.func @transform_3(%arg0: i32) -> (i32, i32) {
    %c0_i32 = arith.constant 0 : i32
    %c0_i32_0 = arith.constant 0 : i32
    %c0_i32_1 = arith.constant 0 : i32
    return %c0_i32, %c0_i32_0 : i32, i32
  }
  func.func @transform_4(%arg0: i32) -> (i32, i32) {
    %c0_i32 = arith.constant 0 : i32
    %c0_i32_0 = arith.constant 0 : i32
    %c0_i32_1 = arith.constant 0 : i32
    return %c0_i32, %c0_i32_0 : i32, i32
  }
  func.func @transform_5(%arg0: i32) -> (i32, i32) {
    %c0_i32 = arith.constant 0 : i32
    %c0_i32_0 = arith.constant 0 : i32
    %c0_i32_1 = arith.constant 0 : i32
    return %c0_i32, %c0_i32_0 : i32, i32
  }
  func.func @transform_6(%arg0: i32) -> (i32, i32) {
    %c0_i32 = arith.constant 0 : i32
    %c0_i32_0 = arith.constant 0 : i32
    %c0_i32_1 = arith.constant 0 : i32
    return %c0_i32, %c0_i32_0 : i32, i32
  }
  func.func @transform_7(%arg0: i32) -> (i32, i32) {
    %c0_i32 = arith.constant 0 : i32
    %c0_i32_0 = arith.constant 0 : i32
    %c0_i32_1 = arith.constant 0 : i32
    return %c0_i32, %c0_i32_0 : i32, i32
  }
  func.func @transform_8(%arg0: i32) -> (i32, i32) {
    %c0_i32 = arith.constant 0 : i32
    %c0_i32_0 = arith.constant 0 : i32
    %c0_i32_1 = arith.constant 0 : i32
    return %c0_i32, %c0_i32_0 : i32, i32
  }
  func.func @transform_9(%arg0: i32) -> (i32, i32) {
    %c0_i32 = arith.constant 0 : i32
    %c0_i32_0 = arith.constant 0 : i32
    %c0_i32_1 = arith.constant 0 : i32
    return %c0_i32, %c0_i32_0 : i32, i32
  }
  func.func @transform_10(%arg0: i32) -> (i32, i32) {
    %c0_i32 = arith.constant 0 : i32
    %c0_i32_0 = arith.constant 0 : i32
    %c0_i32_1 = arith.constant 0 : i32
    return %c0_i32, %c0_i32_0 : i32, i32
  }
  func.func @transform_11(%arg0: i32) -> (i32, i32) {
    %c0_i32 = arith.constant 0 : i32
    %c0_i32_0 = arith.constant 0 : i32
    return %c0_i32, %arg0 : i32, i32
  }
  func.func @transform_12(%arg0: i32) -> (i32, i32) {
    %c0_i32 = arith.constant 0 : i32
    %c0_i32_0 = arith.constant 0 : i32
    return %c0_i32, %arg0 : i32, i32
  }
}

</mosaic_0001>

<bundles_post_ra>
// kernel: tpu_custom_call.1
= control target key start
LH: loop header
LB: loop body
LE: loop exit
PB: predicated region body
PF: predicated region fallthrough
CT: control target
= control target key end

     0   :  { %18 = vsyncpa [#allocation3], 0  ;;  %vm83_vm0 = vcmask 64512   ;;  %v2131_v2 = vmov 0.0   ;;  %vm2132_vm1 = vmmov 0   ;;  %v2133_v4 = vmov 0   ;;  %s2772_s0 = inlined_call_operand.vmem [shape: f32[16,128], index: 0, kind: input, shape index: {}]   ;;  %s2773_s1 = inlined_call_operand.vmem [shape: f32[6,8], index: 1, kind: input, shape index: {}]   ;;  %s2774_s2 = inlined_call_operand.vmem [shape: f32[6,6], index: 2, kind: input, shape index: {}]   ;;  %s2775_s3 = inlined_call_operand.vmem [shape: f32[6,6], index: 3, kind: input, shape index: {}]   ;;  %s2776_s4 = inlined_call_operand.vmem [shape: f32[112,6], index: 4, kind: input, shape index: {}]   ;;  %s2777_s5 = inlined_call_operand.vmem [shape: f32[136,1], index: 5, kind: input, shape index: {}]   ;;  %s2778_s6 = inlined_call_operand.vmem [shape: f32[6,8], index: 6, kind: input, shape index: {}]   ;;  %s2779_s7 = inlined_call_operand.vmem [shape: f32[6,6], index: 7, kind: input, shape index: {}]   ;;  %s2780_s8 = inlined_call_operand.vmem [shape: f32[6,6], index: 8, kind: input, shape index: {}]   ;;  %s2781_s9 = inlined_call_operand.vmem [shape: f32[112,6], index: 9, kind: input, shape index: {}]   ;;  %s2782_s10 = inlined_call_operand.vmem [shape: f32[136,1], index: 10, kind: input, shape index: {}]   ;;  %s2783_s11 = inlined_call_operand.hbm [shape: f32[16,128], index: 11, kind: output, shape index: {0}]   ;;  %s2784_s12 = inlined_call_operand.hbm [shape: f32[1,128], index: 12, kind: output, shape index: {1}]  }
   0x1   :  { %v42_v0 = vld [vmem:[%s2772_s0] sm:$0xff]  ;;  %1827 = vmatprep.subr.mxu0 %v2131_v2  ;;  %1829 = vmatprep.mubr.msk.f32.mxu0 %vm2132_vm1, %v2131_v2  ;;  %v62_v5 = vld [vmem:[%s2777_s5 + $0x8] sm:$0xff] }
   0x2   :  { %v44_v1 = vld [vmem:[%s2773_s1] sm:$0x3f]  ;;  %1828 = vmatpush3.msra.mxu0 %v42_v0  ;;  %1912 = vset.pattern.permute.xlu0 %v2133_v4 }
   0x3   :  { %v61_v3 = vld [vmem:[%s2777_s5] sm:$0xff]  ;;  %1830 = vmatmul.mubr.msk.f32.vlgmr.msra.gmra.mxu0 %vm83_vm0, %v44_v1  ;;  %1832 = vmatprep.subr.mxu1 %v2131_v2 }
   0x4   :  { %80 = vperm.xlu0 %1912, %v61_v3   ;;  %1834 = vmatprep.mubr.msk.f32.mxu1 %vm2132_vm1, %v2131_v2 }
   0x5   :  { %1837 = vmatprep.subr.mxu0 %v2131_v2  ;;  %1839 = vmatprep.mubr.msk.f32.mxu0 %vm2132_vm1, %v2131_v2 }
   0x6   :  { %1913 = vset.pattern.permute.xlu1 %v2133_v4 }
   0x7   :  { %19 = vsyncpa [#allocation5], 0  ;;  %v65_v6 = vld [vmem:[%s2777_s5 + $0x20] sm:$0xff]  ;;  %v67_v7 = vld [vmem:[%s2777_s5 + $0x30] sm:$0xff]  ;;  %vm169_vm3 = vcmask 1045504   ;;  %vm165_vm4 = vcmask 48128  }
   0x8   :  { %162 = vperm.xlu0 %1912, %v62_v5   ;;  %v69_v8 = vld [vmem:[%s2777_s5 + $0x40] sm:$0xff]  ;;  %v71_v9 = vld [vmem:[%s2777_s5 + $0x50] sm:$0xff]  ;;  %v883_v13 = vld [vmem:[%s2782_s10 + $0x8] sm:$0xff] }
   0x9   :  { %v73_v10 = vld [vmem:[%s2777_s5 + $0x60] sm:$0xff]  ;;  %v75_v11 = vld [vmem:[%s2777_s5 + $0x70] sm:$0xff]  ;;  %v885_v14 = vld [vmem:[%s2782_s10 + $0x18] sm:$0xff] }
   0xa   :  { %v77_v12 = vld [vmem:[%s2777_s5 + $0x80] sm:$0xff]  ;;  %v887_v15 = vld [vmem:[%s2782_s10 + $0x28] sm:$0xff]  ;;  %v889_v16 = vld [vmem:[%s2782_s10 + $0x38] sm:$0xff] }
   0xb   :  { %v891_v17 = vld [vmem:[%s2782_s10 + $0x48] sm:$0xff]  ;;  %v893_v18 = vld [vmem:[%s2782_s10 + $0x58] sm:$0xff]  ;;  %v45_v26 = vld [vmem:[%s2774_s2] sm:$0x3f] }
   0xc   :  { %337 = vperm.xlu0 %1912, %v65_v6   ;;  %v895_v19 = vld [vmem:[%s2782_s10 + $0x68] sm:$0xff]  ;;  %v897_v20 = vld [vmem:[%s2782_s10 + $0x78] sm:$0xff]  ;;  %v63_v28 = vld [vmem:[%s2777_s5 + $0x10] sm:$0xff] }
   0xd   :  { %248 = vperm.xlu1 %1913, %v63_v28   ;;  %v64_v29 = vld [vmem:[%s2777_s5 + $0x18] sm:$0xff]  ;;  %v66_v30 = vld [vmem:[%s2777_s5 + $0x28] sm:$0xff]  ;;  %v882_v36 = vld [vmem:[%s2782_s10] sm:$0xff] }
   0xe   :  { %v68_v31 = vld [vmem:[%s2777_s5 + $0x38] sm:$0xff]  ;;  %v70_v32 = vld [vmem:[%s2777_s5 + $0x48] sm:$0xff]  ;;  %v884_v37 = vld [vmem:[%s2782_s10 + $0x10] sm:$0xff] }
   0xf   :  { %v72_v33 = vld [vmem:[%s2777_s5 + $0x58] sm:$0xff]  ;;  %v74_v34 = vld [vmem:[%s2777_s5 + $0x68] sm:$0xff]  ;;  %v886_v38 = vld [vmem:[%s2782_s10 + $0x20] sm:$0xff] }
  0x10   :  { %347 = vperm.xlu0 %1912, %v67_v7   ;;  %v76_v35 = vld [vmem:[%s2777_s5 + $0x78] sm:$0xff]  ;;  %v888_v39 = vld [vmem:[%s2782_s10 + $0x30] sm:$0xff]  ;;  %v890_v40 = vld [vmem:[%s2782_s10 + $0x40] sm:$0xff] }
  0x11   :  { %332 = vperm.xlu1 %1913, %v64_v29   ;;  %v892_v41 = vld [vmem:[%s2782_s10 + $0x50] sm:$0xff]  ;;  %v894_v42 = vld [vmem:[%s2782_s10 + $0x60] sm:$0xff]  ;;  %v48_v59 = vld [vmem:[%s2776_s4 + $0x8] sm:$0xff] }
  0x12   :  { %v896_v43 = vld [vmem:[%s2782_s10 + $0x70] sm:$0xff]  ;;  %v898_v44 = vld [vmem:[%s2782_s10 + $0x80] sm:$0xff]  ;;  %v50_v61 = vld [vmem:[%s2776_s4 + $0x18] sm:$0xff] }
  0x13   :  { %v46_v50 = vld [vmem:[%s2775_s3] sm:$0x3f]  ;;  %v49_v60 = vld [vmem:[%s2776_s4 + $0x10] sm:$0xff]  ;;  %v52_v63 = vld [vmem:[%s2776_s4 + $0x28] sm:$0xff] }
  0x14   :  { %357 = vperm.xlu0 %1912, %v69_v8   ;;  %v47_v52 = vld [vmem:[%s2776_s4] sm:$0xff]  ;;  %v53_v0 = vld [vmem:[%s2776_s4 + $0x30] sm:$0xff]  ;;  %v54_v1 = vld [vmem:[%s2776_s4 + $0x38] sm:$0xff] }
  0x15   :  { %342 = vperm.xlu1 %1913, %v66_v30   ;;  %v51_v62 = vld [vmem:[%s2776_s4 + $0x20] sm:$0xff]  ;;  %v56_v4 = vld [vmem:[%s2776_s4 + $0x48] sm:$0xff]  ;;  %v57_v5 = vld [vmem:[%s2776_s4 + $0x50] sm:$0xff] }
  0x16   :  { %v55_v3 = vld [vmem:[%s2776_s4 + $0x40] sm:$0xff]  ;;  %v58_v6 = vld [vmem:[%s2776_s4 + $0x58] sm:$0xff]  ;;  %v60_v8 = vld [vmem:[%s2776_s4 + $0x68] sm:$0xff] }
  0x17   :  { %v59_v7 = vld [vmem:[%s2776_s4 + $0x60] sm:$0xff] }
  0x18   :  { %367 = vperm.xlu0 %1912, %v71_v9  }
  0x19   :  { %352 = vperm.xlu1 %1913, %v68_v31  }
  0x1c   :  { %377 = vperm.xlu0 %1912, %v73_v10  }
  0x1d   :  { %362 = vperm.xlu1 %1913, %v70_v32  }
  0x20   :  { %387 = vperm.xlu0 %1912, %v75_v11  }
  0x21   :  { %372 = vperm.xlu1 %1913, %v72_v33  }
  0x24   :  { %397 = vperm.xlu0 %1912, %v77_v12  }
  0x25   :  { %382 = vperm.xlu1 %1913, %v74_v34  }
  0x28   :  { %982 = vperm.xlu0 %1912, %v883_v13  }
  0x29   :  { %392 = vperm.xlu1 %1913, %v76_v35  }
  0x2c   :  { %1150 = vperm.xlu0 %1912, %v885_v14  }
  0x2d   :  { %901 = vperm.xlu1 %1913, %v882_v36  }
  0x30   :  { %1160 = vperm.xlu0 %1912, %v887_v15  }
  0x31   :  { %1066 = vperm.xlu1 %1913, %v884_v37  }
  0x34   :  { %1170 = vperm.xlu0 %1912, %v889_v16  }
  0x35   :  { %1155 = vperm.xlu1 %1913, %v886_v38  }
  0x38   :  { %1180 = vperm.xlu0 %1912, %v891_v17  }
  0x39   :  { %1165 = vperm.xlu1 %1913, %v888_v39  }
  0x3c   :  { %1190 = vperm.xlu0 %1912, %v893_v18  }
  0x3d   :  { %1175 = vperm.xlu1 %1913, %v890_v40  }
  0x40   :  { %1200 = vperm.xlu0 %1912, %v895_v19  }
  0x41   :  { %1185 = vperm.xlu1 %1913, %v892_v41  }
  0x44   :  { %1210 = vperm.xlu0 %1912, %v897_v20  }
  0x45   :  { %1195 = vperm.xlu1 %1913, %v894_v42  }
  0x49   :  { %1205 = vperm.xlu1 %1913, %v896_v43  }
  0x4d   :  { %1215 = vperm.xlu1 %1913, %v898_v44  }
  0x7f   :  { %v81_v21 = vpop.permute.xlu0 %80 }
  0x83   :  { %v163_v45 = vpop.permute.xlu0 %162 }
  0x87   :  { %v338_v9 = vpop.permute.xlu0 %337 }
  0x88   :  { %v249_v53 = vpop.permute.xlu1 %248 }
  0x8b   :  { %v348_v11 = vpop.permute.xlu0 %347 }
  0x8c   :  { %v333_v10 = vpop.permute.xlu1 %332 }
  0x8f   :  { %v358_v13 = vpop.permute.xlu0 %357 }
  0x90   :  { %v343_v12 = vpop.permute.xlu1 %342 }
  0x93   :  { %v368_v20 = vpop.permute.xlu0 %367 }
  0x94   :  { %v353_v16 = vpop.permute.xlu1 %352 }
  0x97   :  { %v378_v31 = vpop.permute.xlu0 %377 }
  0xc3   :  { %v153_v22 = vpop.f32.mrf.mxu0 }
  0xc4   :  { %v154_v23 = vadd.f32 %v153_v22, %v81_v21 }
  0xc5   :  { %v1831_v24 = vpop.f32.mrf.mxu0 }
  0xc6   :  { %v158_v25 = vmul.f32 0.2, %v154_v23  ;;  %vm157_vm2 = vcmp.gt.f32.partialorder %v154_v23, 0.0 }
  0xc8   :  { %v159_v27 = vsel %vm157_vm2, %v154_v23, %v158_v25  ;;  %v363_v25 = vpop.permute.xlu1 %362 }
  0xc9   :  { %1833 = vmatpush3.msk.msra.mxu1 %vm169_vm3, %v159_v27 }
  0xca   :  { %1835 = vmatmul.mubr.msk.f32.vlgmr.msra.gmra.mxu1 %vm165_vm4, %v45_v26 }
  0xcb   :  { %1844 = vmatprep.mubr.msk.f32.mxu1 %vm165_vm4, %v47_v52 }
  0xcc   :  { %v373_v35 = vpop.permute.xlu1 %372 }
 0x18a   :  { %v239_v46 = vpop.f32.mrf.mxu1 }
 0x18b   :  { %v240_v47 = vadd.f32 %v239_v46, %v163_v45  ;;  %v388_v46 = vpop.permute.xlu0 %387 }
 0x18c   :  { %v1836_v48 = vpop.f32.mrf.mxu1 }
 0x18d   :  { %vm243_vm5 = vcmp.gt.f32.partialorder %v240_v47, 0.0  ;;  %v244_v49 = vmul.f32 0.2, %v240_v47 }
 0x18f   :  { %v245_v51 = vsel %vm243_vm5, %v240_v47, %v244_v49 }
 0x190   :  { %1838 = vmatpush3.msk.msra.mxu0 %vm169_vm3, %v245_v51 }
 0x191   :  { %1840 = vmatmul.mubr.msk.f32.vlgmr.msra.gmra.mxu0 %vm165_vm4, %v46_v50  ;;  %1865 = vmatprep.subr.mxu0 %v2131_v2 }
 0x192   :  { %1867 = vmatprep.mubr.msk.f32.mxu0 %vm2132_vm1, %v2131_v2 }
 0x251   :  { %v323_v54 = vpop.f32.mrf.mxu0 }
 0x252   :  { %v324_v55 = vadd.f32 %v323_v54, %v249_v53 }
 0x253   :  { %v1841_v56 = vpop.f32.mrf.mxu0 }
 0x254   :  { %vm327_vm6 = vcmp.gt.f32.partialorder %v324_v55, 0.0  ;;  %v328_v57 = vmul.f32 0.2, %v324_v55 }
 0x256   :  { %v329_v58 = vsel %vm327_vm6, %v324_v55, %v328_v57  ;;  %v383_v55 = vpop.permute.xlu1 %382 }
 0x257   :  { %1842 = vmatprep.subr.msk.mxu1 %vm169_vm3, %v329_v58 }
 0x258   :  { %1843 = vmatpush3.msk.msra.mxu1 %vm169_vm3, %v329_v58 }
 0x259   :  { %1845 = vmatmul.mubr.msk.f32.vlgmr.msra.gmra.mxu1 %vm165_vm4, %v48_v59 }
 0x25a   :  { %1847 = vmatprep.mubr.msk.f32.mxu1 %vm165_vm4, %v49_v60 }
 0x25d   :  { %1848 = vmatmul.mubr.msk.f32.gmra.mxu1 %vm165_vm4, %v50_v61 }
 0x25e   :  { %1850 = vmatprep.mubr.msk.f32.mxu1 %vm165_vm4, %v51_v62 }
 0x261   :  { %1851 = vmatmul.mubr.msk.f32.gmra.mxu1 %vm165_vm4, %v52_v63  ;;  %v398_v63 = vpop.permute.xlu0 %397 }
 0x262   :  { %1853 = vmatprep.mubr.msk.f32.mxu1 %vm165_vm4, %v53_v0 }
 0x265   :  { %1854 = vmatmul.mubr.msk.f32.gmra.mxu1 %vm165_vm4, %v54_v1 }
 0x266   :  { %1856 = vmatprep.mubr.msk.f32.mxu1 %vm165_vm4, %v55_v3 }
 0x269   :  { %1857 = vmatmul.mubr.msk.f32.gmra.mxu1 %vm165_vm4, %v56_v4 }
 0x26a   :  { %1859 = vmatprep.mubr.msk.f32.mxu1 %vm165_vm4, %v57_v5 }
 0x26d   :  { %1860 = vmatmul.mubr.msk.f32.gmra.mxu1 %vm165_vm4, %v58_v6 }
 0x26e   :  { %1862 = vmatprep.mubr.msk.f32.mxu1 %vm165_vm4, %v59_v7 }
 0x271   :  { %1863 = vmatmul.mubr.msk.f32.gmra.mxu1 %vm165_vm4, %v60_v8 }
 0x319   :  { %v1846_v14 = vpop.f32.mrf.mxu1 }
 0x31a   :  { %v517_v19 = vadd.f32 %v1846_v14, %v338_v9 }
 0x31b   :  { %v511_v15 = vpop.f32.mrf.mxu1 }
 0x31c   :  { %v512_v17 = vadd.f32 %v511_v15, %v333_v10 }
 0x31d   :  { %v1849_v18 = vpop.f32.mrf.mxu1 }
 0x31e   :  { %v580_v22 = vmax.f32 %v512_v17, %v517_v19  ;;  %v527_v26 = vadd.f32 %v1849_v18, %v348_v11  ;;  %v393_v11 = vpop.permute.xlu1 %392 }
 0x31f   :  { %v521_v21 = vpop.f32.mrf.mxu1 }
 0x320   :  { %v522_v23 = vadd.f32 %v521_v21, %v343_v12 }
 0x321   :  { %v1852_v24 = vpop.f32.mrf.mxu1 }
 0x322   :  { %v581_v27 = vmax.f32 %v580_v22, %v522_v23  ;;  %v537_v39 = vadd.f32 %v1852_v24, %v358_v13 }
 0x323   :  { %v531_v28 = vpop.f32.mrf.mxu1 }
 0x324   :  { %v532_v29 = vadd.f32 %v531_v28, %v353_v16  ;;  %v582_v30 = vmax.f32 %v581_v27, %v527_v26 }
 0x325   :  { %v1855_v32 = vpop.f32.mrf.mxu1 }
 0x326   :  { %v583_v33 = vmax.f32 %v582_v30, %v532_v29  ;;  %v547_v48 = vadd.f32 %v1855_v32, %v368_v20 }
 0x327   :  { %v541_v34 = vpop.f32.mrf.mxu1 }
 0x328   :  { %v584_v36 = vsub.f32 %v512_v17, %v583_v33  ;;  %v587_v37 = vsub.f32 %v517_v19, %v583_v33  ;;  %v590_v38 = vsub.f32 %v522_v23, %v583_v33  ;;  %v593_v40 = vsub.f32 %v527_v26, %v583_v33 }
 0x329   :  { %v542_v41 = vadd.f32 %v541_v34, %v363_v25  ;;  %v1858_v42 = vpop.f32.mrf.mxu1  ;;  %v596_v45 = vsub.f32 %v532_v29, %v583_v33 }
 0x32a   :  { %v585_v43 = vmul.f32 1.442695, %v584_v36  ;;  %v588_v44 = vmul.f32 1.442695, %v587_v37  ;;  %v591_v47 = vmul.f32 1.442695, %v590_v38  ;;  %v557_v58 = vadd.f32 %v1858_v42, %v378_v31 }
 0x32b   :  { %v634_v49 = vmax.f32 %v537_v39, %v542_v41  ;;  %v551_v50 = vpop.f32.mrf.mxu1  ;;  %v594_v52 = vmul.f32 1.442695, %v593_v40  ;;  %v597_v56 = vmul.f32 1.442695, %v596_v45 }
 0x32c   :  { %1914 = vpow2.f32 %v585_v43  ;;  %v552_v51 = vadd.f32 %v551_v50, %v373_v35 }
 0x32d   :  { %1916 = vpow2.f32 %v588_v44  ;;  %v635_v53 = vmax.f32 %v634_v49, %v547_v48  ;;  %v1861_v54 = vpop.f32.mrf.mxu1 }
 0x32e   :  { %v2392_v57 = vadd.f32 %v1861_v54, %v388_v46  ;;  %1918 = vpow2.f32 %v591_v47 }
 0x32f   :  { %v636_v59 = vmax.f32 %v635_v53, %v552_v51  ;;  %v561_v60 = vpop.f32.mrf.mxu1  ;;  %1920 = vpow2.f32 %v594_v52 }
 0x330   :  { %v722_v61 = vand.u32 2147483647, %v2392_v57  ;;  %v2395_v62 = vadd.f32 %v561_v60, %v383_v55  ;;  %1922 = vpow2.f32 %v597_v56 }
 0x331   :  { %v637_v0 = vmax.f32 %v636_v59, %v557_v58  ;;  %v1864_v1 = vpop.f32.mrf.mxu1 }
 0x332   :  { %v723_v3 = vsub.f32 0.0, %v722_v61  ;;  %v695_v4 = vand.u32 2147483647, %v2395_v62  ;;  %v2398_v5 = vadd.f32 %v1864_v1, %v398_v63 }
 0x333   :  { %v638_v6 = vsub.f32 %v537_v39, %v637_v0  ;;  %v641_v7 = vsub.f32 %v542_v41, %v637_v0  ;;  %v644_v8 = vsub.f32 %v547_v48, %v637_v0  ;;  %v647_v9 = vsub.f32 %v552_v51, %v637_v0  ;;  %v571_v10 = vpop.f32.mrf.mxu1 }
 0x334   :  { %v650_v12 = vsub.f32 %v557_v58, %v637_v0  ;;  %v724_v13 = vmul.f32 1.442695, %v723_v3  ;;  %v696_v14 = vsub.f32 0.0, %v695_v4  ;;  %v2400_v18 = vadd.f32 %v571_v10, %v393_v11 }
 0x335   :  { %v639_v15 = vmul.f32 1.442695, %v638_v6  ;;  %v642_v16 = vmul.f32 1.442695, %v641_v7  ;;  %v645_v17 = vmul.f32 1.442695, %v644_v8 }
 0x336   :  { %v648_v19 = vmul.f32 1.442695, %v647_v9  ;;  %1924 = vpow2.f32 %v724_v13  ;;  %v651_v20 = vmul.f32 1.442695, %v650_v12  ;;  %v790_v21 = vand.u32 2147483647, %v2398_v5 }
 0x337   :  { %1926 = vpow2.f32 %v639_v15  ;;  %v756_v22 = vand.u32 2147483647, %v2400_v18  ;;  %v697_v23 = vmul.f32 1.442695, %v696_v14  ;;  %v721_v7 = vmax.f32 %v2392_v57, 0.0 }
 0x338   :  { %1928 = vpow2.f32 %v642_v16  ;;  %v791_v25 = vsub.f32 0.0, %v790_v21  ;;  %v694_v9 = vmax.f32 %v2395_v62, 0.0  ;;  %v755_v57 = vmax.f32 %v2400_v18, 0.0 }
 0x339   :  { %v1915_v24 = vpop.eup %1914  ;;  %1930 = vpow2.f32 %v645_v17  ;;  %v757_v26 = vsub.f32 0.0, %v756_v22 }
 0x33a   :  { %v1917_v27 = vpop.eup %1916  ;;  %1932 = vpow2.f32 %v648_v19  ;;  %v792_v29 = vmul.f32 1.442695, %v791_v25 }
 0x33b   :  { %v599_v28 = vadd.f32 %v1917_v27, %v1915_v24  ;;  %1934 = vpow2.f32 %v651_v20  ;;  %v758_v30 = vmul.f32 1.442695, %v757_v26  ;;  %v1919_v31 = vpop.eup %1918  ;;  %v789_v20 = vmax.f32 %v2398_v5, 0.0 }
 0x33c   :  { %1936 = vpow2.f32 %v697_v23  ;;  %v1921_v33 = vpop.eup %1920 }
 0x33d   :  { %v600_v32 = vadd.f32 %v1919_v31, %v599_v28  ;;  %1938 = vpow2.f32 %v792_v29  ;;  %v1923_v34 = vpop.eup %1922 }
 0x33e   :  { %1940 = vpow2.f32 %v758_v30 }
 0x33f   :  { %v601_v35 = vadd.f32 %v1921_v33, %v600_v32 }
 0x341   :  { %v602_v36 = vadd.f32 %v1923_v34, %v601_v35 }
 0x343   :  { %v1925_v37 = vpop.eup %1924  ;;  %1942 = vrcp.f32 %v602_v36 }
 0x344   :  { %v1927_v38 = vpop.eup %1926  ;;  %v726_v39 = vadd.f32 1.0, %v1925_v37 }
 0x345   :  { %v1929_v40 = vpop.eup %1928 }
 0x346   :  { %v1931_v41 = vpop.eup %1930  ;;  %v653_v42 = vadd.f32 %v1929_v40, %v1927_v38  ;;  %1944 = vlog2.f32 %v726_v39 }
 0x347   :  { %v1933_v43 = vpop.eup %1932 }
 0x348   :  { %v1935_v44 = vpop.eup %1934  ;;  %v654_v45 = vadd.f32 %v1931_v41, %v653_v42 }
 0x349   :  { %v1937_v46 = vpop.eup %1936 }
 0x34a   :  { %v1939_v47 = vpop.eup %1938  ;;  %v655_v48 = vadd.f32 %v1933_v43, %v654_v45  ;;  %v699_v49 = vadd.f32 1.0, %v1937_v46 }
 0x34b   :  { %v1941_v50 = vpop.eup %1940  ;;  %v794_v51 = vadd.f32 1.0, %v1939_v47 }
 0x34c   :  { %v656_v52 = vadd.f32 %v1935_v44, %v655_v48  ;;  %1946 = vlog2.f32 %v699_v49  ;;  %v760_v53 = vadd.f32 1.0, %v1941_v50 }
 0x34d   :  { %1948 = vlog2.f32 %v794_v51 }
 0x34e   :  { %1950 = vrcp.f32 %v656_v52 }
 0x34f   :  { %1952 = vlog2.f32 %v760_v53 }
 0x350   :  { %v1943_v54 = vpop.eup %1942 }
 0x351   :  { %v604_v55 = vmul.f32 8.0, %v1943_v54 }
 0x353   :  { %v1945_v56 = vpop.eup %1944  ;;  %v605_v58 = vmul.f32 %v1915_v24, %v604_v55  ;;  %v606_v59 = vmul.f32 %v1917_v27, %v604_v55  ;;  %v607_v60 = vmul.f32 %v1919_v31, %v604_v55  ;;  %v608_v61 = vmul.f32 %v1921_v33, %v604_v55 }
 0x354   :  { %v609_v1 = vmul.f32 %v1923_v34, %v604_v55  ;;  %v728_v4 = vmul.f32 0.6931472, %v1945_v56 }
 0x355   :  { %v610_v63 = vmul.f32 1.442695, %v605_v58  ;;  %v612_v0 = vmul.f32 1.442695, %v606_v59  ;;  %v614_v3 = vmul.f32 1.442695, %v607_v60 }
 0x356   :  { %v616_v6 = vmul.f32 1.442695, %v608_v61  ;;  %v618_v11 = vmul.f32 1.442695, %v609_v1  ;;  %v2406_v12 = vadd.f32 %v728_v4, %v721_v7 }
 0x357   :  { %1954 = vpow2.f32 %v610_v63 }
 0x358   :  { %1956 = vpow2.f32 %v612_v0  ;;  %v731_v23 = vand.u32 2147483647, %v2406_v12 }
 0x359   :  { %v1947_v8 = vpop.eup %1946  ;;  %1958 = vpow2.f32 %v614_v3 }
 0x35a   :  { %v1949_v10 = vpop.eup %1948  ;;  %v701_v13 = vmul.f32 0.6931472, %v1947_v8  ;;  %1960 = vpow2.f32 %v616_v6  ;;  %v732_v5 = vsub.f32 0.0, %v731_v23  ;;  %v2423_v23 = vld [vmem:[%s2772_s0 + $0x8] sm:$0xff] }
 0x35b   :  { %v1951_v14 = vpop.eup %1950  ;;  %v796_v15 = vmul.f32 0.6931472, %v1949_v10  ;;  %1962 = vpow2.f32 %v618_v11  ;;  %vm860_vm11 = vcmp.ge.f32.partialorder %v2423_v23, -4.0  ;;  %vm861_vm12 = vcmp.le.f32.partialorder %v2423_v23, 4.0 }
 0x35c   :  { %v1953_v16 = vpop.eup %1952  ;;  %v658_v17 = vmul.f32 8.0, %v1951_v14  ;;  %v2408_v19 = vadd.f32 %v701_v13, %v694_v9  ;;  %vm2530_vm13 = vmand %vm860_vm11, %vm861_vm12 }
 0x35d   :  { %v762_v21 = vmul.f32 0.6931472, %v1953_v16  ;;  %v2414_v26 = vadd.f32 %v796_v15, %v789_v20 }
 0x35e   :  { %v659_v62 = vmul.f32 %v1927_v38, %v658_v17  ;;  %v660_v22 = vmul.f32 %v1929_v40, %v658_v17  ;;  %v661_v24 = vmul.f32 %v1931_v41, %v658_v17  ;;  %v704_v25 = vand.u32 2147483647, %v2408_v19 }
 0x35f   :  { %v2416_v29 = vadd.f32 %v762_v21, %v755_v57  ;;  %v662_v30 = vmul.f32 %v1933_v43, %v658_v17  ;;  %v663_v32 = vmul.f32 %v1935_v44, %v658_v17  ;;  %v799_v34 = vand.u32 2147483647, %v2414_v26 }
 0x360   :  { %v664_v27 = vmul.f32 1.442695, %v659_v62  ;;  %v666_v28 = vmul.f32 1.442695, %v660_v22  ;;  %v705_v31 = vsub.f32 0.0, %v704_v25 }
 0x361   :  { %v765_v18 = vand.u32 2147483647, %v2416_v29  ;;  %v668_v33 = vmul.f32 1.442695, %v661_v24  ;;  %v670_v38 = vmul.f32 1.442695, %v662_v30 }
 0x362   :  { %1964 = vpow2.f32 %v664_v27  ;;  %v706_v36 = vmul.f32 1.442695, %v705_v31  ;;  %v733_v41 = vmul.f32 1.442695, %v732_v5  ;;  %v672_v45 = vmul.f32 1.442695, %v663_v32 }
 0x363   :  { %1966 = vpow2.f32 %v666_v28  ;;  %v766_v39 = vsub.f32 0.0, %v765_v18  ;;  %v800_v43 = vsub.f32 0.0, %v799_v34  ;;  %v2428_v18 = vclamps-f32 %v2423_v23, 4.0 }
 0x364   :  { %v1955_v35 = vpop.eup %1954  ;;  %1968 = vpow2.f32 %v668_v33 }
 0x365   :  { %v1957_v37 = vpop.eup %1956  ;;  %1970 = vpow2.f32 %v706_v36  ;;  %v767_v44 = vmul.f32 1.442695, %v766_v39  ;;  %v801_v50 = vmul.f32 1.442695, %v800_v43  ;;  %v703_v39 = vmax.f32 %v2408_v19, 0.0 }
 0x366   :  { %v620_v40 = vadd.f32 %v1957_v37, %v1955_v35  ;;  %v1959_v42 = vpop.eup %1958  ;;  %1972 = vpow2.f32 %v670_v38  ;;  %v730_v19 = vmax.f32 %v2406_v12, 0.0 }
 0x367   :  { %v1961_v47 = vpop.eup %1960  ;;  %1974 = vpow2.f32 %v733_v41 }
 0x368   :  { %v621_v46 = vadd.f32 %v1959_v42, %v620_v40  ;;  %v1963_v49 = vpop.eup %1962  ;;  %1976 = vpow2.f32 %v672_v45 }
 0x369   :  { %1978 = vpow2.f32 %v767_v44 }
 0x36a   :  { %v622_v48 = vadd.f32 %v1961_v47, %v621_v46 }
 0x36c   :  { %v623_v51 = vadd.f32 %v1963_v49, %v622_v48 }
 0x36e   :  { %1980 = vrcp.f32 %v623_v51  ;;  %v764_v51 = vmax.f32 %v2416_v29, 0.0 }
 0x36f   :  { %v1965_v52 = vpop.eup %1964  ;;  %1982 = vpow2.f32 %v801_v50 }
 0x370   :  { %v1967_v53 = vpop.eup %1966 }
 0x371   :  { %v674_v54 = vadd.f32 %v1967_v53, %v1965_v52  ;;  %v1969_v55 = vpop.eup %1968 }
 0x372   :  { %v1971_v56 = vpop.eup %1970 }
 0x373   :  { %v675_v58 = vadd.f32 %v1969_v55, %v674_v54  ;;  %v1973_v59 = vpop.eup %1972  ;;  %v708_v0 = vadd.f32 1.0, %v1971_v56 }
 0x374   :  { %v1975_v60 = vpop.eup %1974 }
 0x375   :  { %v676_v61 = vadd.f32 %v1973_v59, %v675_v58  ;;  %v1977_v63 = vpop.eup %1976  ;;  %v735_v4 = vadd.f32 1.0, %v1975_v60 }
 0x376   :  { %v1979_v3 = vpop.eup %1978 }
 0x377   :  { %v677_v1 = vadd.f32 %v1977_v63, %v676_v61  ;;  %v769_v9 = vadd.f32 1.0, %v1979_v3 }
 0x379   :  { %1984 = vrcp.f32 %v677_v1 }
 0x37a   :  { %1986 = vlog2.f32 %v708_v0 }
 0x37b   :  { %v1981_v6 = vpop.eup %1980  ;;  %1988 = vlog2.f32 %v735_v4 }
 0x37c   :  { %v1983_v7 = vpop.eup %1982  ;;  %v625_v8 = vmul.f32 0.995, %v1981_v6  ;;  %1990 = vlog2.f32 %v769_v9 }
 0x37d   :  { %v803_v14 = vadd.f32 1.0, %v1983_v7 }
 0x37e   :  { %v626_v10 = vmul.f32 %v1955_v35, %v625_v8  ;;  %v628_v11 = vmul.f32 %v1957_v37, %v625_v8  ;;  %v630_v13 = vmul.f32 %v1959_v42, %v625_v8  ;;  %v632_v57 = vmul.f32 %v1961_v47, %v625_v8  ;;  %v865_v8 = vld [vmem:[%s2778_s6] sm:$0x3f] }
 0x37f   :  { %1992 = vlog2.f32 %v803_v14 }
 0x380   :  { %v627_v15 = vadd.f32 0.001, %v626_v10  ;;  %v629_v16 = vadd.f32 0.001, %v628_v11  ;;  %v631_v17 = vadd.f32 0.001, %v630_v13 }
 0x381   :  { %v633_v28 = vadd.f32 0.001, %v632_v57 }
 0x382   :  { %v715_v20 = vadd.f32 %v629_v16, %v627_v15  ;;  %v690_v21 = vmul.f32 8.0, %v627_v15 }
 0x384   :  { %v717_v62 = vmul.f32 8.0, %v715_v20  ;;  %v749_v22 = vadd.f32 %v715_v20, %v631_v17  ;;  %v1748_v30 = vadd.f32 -4.0, %v690_v21 }
 0x386   :  { %v2425_v24 = vadd.f32 -4.0, %v717_v62  ;;  %v751_v25 = vmul.f32 8.0, %v749_v22  ;;  %v1985_v27 = vpop.eup %1984  ;;  %v783_v34 = vadd.f32 %v749_v22, %v633_v28  ;;  %v713_v41 = vadd.f32 4.0, %v1748_v30 }
 0x387   :  { %v1987_v31 = vpop.eup %1986  ;;  %v679_v5 = vmul.f32 0.995, %v1985_v27  ;;  %vm2435_vm7 = vcmp.ge.f32.partialorder %v2428_v18, %v1748_v30  ;;  %v798_v62 = vmax.f32 %v2414_v26, 0.0 }
 0x388   :  { %v2430_v32 = vadd.f32 -4.0, %v751_v25  ;;  %v744_v33 = vsub.f32 %v2425_v24, %v1748_v30  ;;  %v1989_v35 = vpop.eup %1988  ;;  %v710_v40 = vmul.f32 0.6931472, %v1987_v31  ;;  %v785_v50 = vmul.f32 8.0, %v783_v34 }
 0x389   :  { %v680_v36 = vmul.f32 %v1965_v52, %v679_v5  ;;  %v682_v37 = vmul.f32 %v1967_v53, %v679_v5  ;;  %v684_v38 = vmul.f32 %v1969_v55, %v679_v5  ;;  %v1991_v47 = vpop.eup %1990  ;;  %v737_v44 = vmul.f32 0.6931472, %v1989_v35 }
 0x38a   :  { %v778_v46 = vsub.f32 %v2430_v32, %v2425_v24  ;;  %v686_v48 = vmul.f32 %v1973_v59, %v679_v5  ;;  %v745_v49 = vsel %vm2435_vm7, %v744_v33, %v713_v41  ;;  %v711_v55 = vadd.f32 %v710_v40, %v703_v39 }
 0x38b   :  { %v681_v42 = vadd.f32 0.001, %v680_v36  ;;  %v683_v45 = vadd.f32 0.001, %v682_v37  ;;  %v685_v52 = vadd.f32 0.001, %v684_v38  ;;  %vm2447_vm8 = vcmp.ge.f32.partialorder %v2428_v18, %v2425_v24 }
 0x38c   :  { %v1993_v54 = vpop.eup %1992  ;;  %v1754_v59 = vadd.f32 -4.0, %v785_v50  ;;  %v771_v60 = vmul.f32 0.6931472, %v1991_v47  ;;  %v779_v12 = vsel %vm2447_vm8, %v778_v46, %v745_v49  ;;  %v738_v0 = vadd.f32 %v737_v44, %v730_v19 }
 0x38d   :  { %v716_v53 = vadd.f32 %v683_v45, %v681_v42  ;;  %v692_v56 = vmul.f32 8.0, %v681_v42  ;;  %v687_v29 = vadd.f32 0.001, %v686_v48  ;;  %v805_v4 = vmul.f32 0.6931472, %v1993_v54 }
 0x38e   :  { %v812_v1 = vsub.f32 %v1754_v59, %v2430_v32  ;;  %v821_v3 = vsub.f32 4.0, %v1754_v59  ;;  %vm2458_vm9 = vcmp.ge.f32.partialorder %v2428_v18, %v2430_v32  ;;  %vm2467_vm10 = vcmp.ge.f32.partialorder %v2428_v18, %v1754_v59 }
 0x38f   :  { %v719_v61 = vmul.f32 8.0, %v716_v53  ;;  %v750_v63 = vadd.f32 %v716_v53, %v685_v52  ;;  %v2462_v9 = vadd.f32 -4.0, %v692_v56  ;;  %v712_v14 = vadd.f32 0.001, %v711_v55 }
 0x390   :  { %v813_v11 = vsel %vm2458_vm9, %v812_v1, %v779_v12  ;;  %v772_v15 = vadd.f32 %v771_v60, %v764_v51  ;;  %v741_v20 = vsel %vm2435_vm7, %v1748_v30, -4.0  ;;  %v739_v5 = vadd.f32 0.001, %v738_v0 }
 0x391   :  { %v2454_v6 = vadd.f32 -4.0, %v719_v61  ;;  %v753_v7 = vmul.f32 8.0, %v750_v63  ;;  %v784_v10 = vadd.f32 %v750_v63, %v687_v29  ;;  %v822_v17 = vsel %vm2467_vm10, %v821_v3, %v813_v11 }
 0x392   :  { %1994 = vrcp.f32 %v822_v17  ;;  %v714_v22 = vadd.f32 4.0, %v2462_v9  ;;  %v773_v27 = vadd.f32 0.001, %v772_v15  ;;  %v775_v28 = vsel %vm2447_vm8, %v2425_v24, %v741_v20 }
 0x393   :  { %v2471_v16 = vadd.f32 -4.0, %v753_v7  ;;  %v746_v57 = vsub.f32 %v2454_v6, %v2462_v9  ;;  %v787_v21 = vmul.f32 8.0, %v784_v10  ;;  %v806_v30 = vadd.f32 %v805_v4, %v798_v62 }
 0x394   :  { %v743_v33 = vsel %vm2435_vm7, %v712_v14, 1.0  ;;  %v748_v26 = vsel %vm2435_vm7, %v739_v5, %v712_v14  ;;  %v809_v35 = vsel %vm2458_vm9, %v2430_v32, %v775_v28  ;;  %v742_v10 = vsel %vm2435_vm7, %v2462_v9, -4.0 }
 0x395   :  { %v1755_v25 = vadd.f32 -4.0, %v787_v21  ;;  %v780_v31 = vsub.f32 %v2471_v16, %v2454_v6  ;;  %v747_v34 = vsel %vm2435_vm7, %v746_v57, %v714_v22  ;;  %v777_v36 = vsel %vm2447_vm8, %v739_v5, %v743_v33 }
 0x396   :  { %v782_v38 = vsel %vm2447_vm8, %v773_v27, %v748_v26  ;;  %v807_v39 = vadd.f32 0.001, %v806_v30  ;;  %v818_v40 = vsel %vm2467_vm10, %v1754_v59, %v809_v35  ;;  %v811_v42 = vsel %vm2458_vm9, %v773_v27, %v777_v36  ;;  %v902_v27 = vpop.permute.xlu1 %901  ;;  %v866_v30 = vld [vmem:[%s2779_s7] sm:$0x3f] }
 0x397   :  { %v814_v24 = vsub.f32 %v1755_v25, %v2471_v16  ;;  %v781_v37 = vsel %vm2447_vm8, %v780_v31, %v747_v34  ;;  %v823_v41 = vsub.f32 4.0, %v1755_v25  ;;  %v829_v46 = vsub.f32 %v2428_v18, %v818_v40  ;;  %v983_v34 = vpop.permute.xlu0 %982 }
 0x398   :  { %v816_v45 = vsel %vm2458_vm9, %v807_v39, %v782_v38  ;;  %v820_v44 = vsel %vm2467_vm10, %v807_v39, %v811_v42  ;;  %v776_v15 = vsel %vm2447_vm8, %v2454_v6, %v742_v10  ;;  %v868_v39 = vld [vmem:[%s2781_s9] sm:$0xff] }
 0x399   :  { %v815_v32 = vsel %vm2458_vm9, %v814_v24, %v781_v37  ;;  %v825_v49 = vsel %vm2467_vm10, 1.0, %v816_v45  ;;  %v810_v17 = vsel %vm2458_vm9, %v2471_v16, %v776_v15  ;;  %v867_v37 = vld [vmem:[%s2780_s8] sm:$0x3f] }
 0x39a   :  { %v824_v48 = vsel %vm2467_vm10, %v823_v41, %v815_v32  ;;  %v838_v52 = vadd.f32 %v825_v49, %v820_v44  ;;  %v819_v43 = vsel %vm2467_vm10, %v1755_v25, %v810_v17  ;;  %v1067_v40 = vpop.permute.xlu1 %1066 }
 0x39f   :  { %v1995_v47 = vpop.eup %1994 }
 0x3a0   :  { %v828_v50 = vmul.f32 %v1995_v47, %v824_v48  ;;  %v830_v19 = vmul.f32 %v1995_v47, %v829_v46  ;;  %v869_v47 = vld [vmem:[%s2781_s9 + $0x8] sm:$0xff] }
 0x3a2   :  { %v831_v51 = vsub.f32 1.0, %v830_v19  ;;  %v839_v53 = vmul.f32 2.0, %v828_v50  ;;  %v848_v54 = vmul.f32 %v830_v19, %v825_v49  ;;  %v847_v29 = vmul.f32 %v828_v50, %v828_v50  ;;  %v880_v49 = vld [vmem:[%s2781_s9 + $0x60] sm:$0xff] }
 0x3a3   :  { %v833_v3 = vmul.f32 %v830_v19, %v828_v50 }
 0x3a4   :  { %v832_v55 = vmul.f32 %v831_v51, %v830_v19  ;;  %v840_v56 = vsub.f32 %v838_v52, %v839_v53  ;;  %v852_v59 = vmul.f32 %v831_v51, %v820_v44  ;;  %v849_v18 = vmul.f32 %v848_v54, %v830_v19  ;;  %v873_v52 = vld [vmem:[%s2781_s9 + $0x28] sm:$0xff]  ;;  %v875_v54 = vld [vmem:[%s2781_s9 + $0x38] sm:$0xff] }
 0x3a5   :  { %v834_v11 = vmul.f32 %v833_v3, %v830_v19  ;;  %v881_v19 = vld [vmem:[%s2781_s9 + $0x68] sm:$0xff] }
 0x3a6   :  { %v841_v60 = vmul.f32 %v840_v56, %v832_v55  ;;  %v850_v61 = vmul.f32 %v839_v53, %v832_v55  ;;  %v853_v63 = vmul.f32 %v852_v59, %v831_v51  ;;  %v835_v7 = vmul.f32 %v832_v55, %v820_v44  ;;  %v879_v44 = vld [vmem:[%s2781_s9 + $0x58] sm:$0xff]  ;;  %v872_v51 = vld [vmem:[%s2781_s9 + $0x20] sm:$0xff]  ;;  %v874_v53 = vld [vmem:[%s2781_s9 + $0x30] sm:$0xff]  ;;  %v1156_v59 = vpop.permute.xlu1 %1155 }
 0x3a7   :  { %v876_v55 = vld [vmem:[%s2781_s9 + $0x40] sm:$0xff]  ;;  %v877_v56 = vld [vmem:[%s2781_s9 + $0x48] sm:$0xff] }
 0x3a8   :  { %v842_v12 = vadd.f32 %v841_v60, %v828_v50  ;;  %v851_v0 = vadd.f32 %v850_v61, %v849_v18  ;;  %v836_v14 = vadd.f32 %v835_v7, %v834_v11  ;;  %v871_v50 = vld [vmem:[%s2781_s9 + $0x18] sm:$0xff]  ;;  %v1151_v18 = vpop.permute.xlu0 %1150 }
 0x3aa   :  { %1996 = vrcp.f32 %v842_v12  ;;  %v854_v1 = vadd.f32 %v853_v63, %v851_v0  ;;  %v837_v20 = vmul.f32 %v836_v14, %v824_v48  ;;  %v870_v48 = vld [vmem:[%s2781_s9 + $0x10] sm:$0xff]  ;;  %v1166_v60 = vpop.permute.xlu1 %1165 }
 0x3ac   :  { %v855_v4 = vmul.f32 %v854_v1, %v847_v29  ;;  %v1161_v61 = vpop.permute.xlu0 %1160 }
 0x3ae   :  { %v1176_v63 = vpop.permute.xlu1 %1175 }
 0x3b0   :  { %v1171_v12 = vpop.permute.xlu0 %1170 }
 0x3b2   :  { %v1186_v0 = vpop.permute.xlu1 %1185 }
 0x3b4   :  { %v1181_v29 = vpop.permute.xlu0 %1180 }
 0x3b6   :  { %v2622_v1 = vpop.permute.xlu1 %1195 }
 0x3b7   :  { %v1997_v57 = vpop.eup %1996 }
 0x3b8   :  { %v845_v21 = vmul.f32 %v1997_v57, %v837_v20  ;;  %v856_v62 = vmul.f32 %v1997_v57, %v1997_v57  ;;  %v1191_v3 = vpop.permute.xlu0 %1190 }
 0x3ba   :  { %v846_v58 = vadd.f32 %v845_v21, %v819_v43  ;;  %v857_v6 = vmul.f32 %v856_v62, %v855_v4  ;;  %v1206_v4 = vpop.permute.xlu1 %1205 }
 0x3bc   :  { %1998 = vlog2.f32 %v857_v6  ;;  %v863_v16 = vsel %vm2530_vm13, %v846_v58, %v2423_v23  ;;  %v1201_v11 = vpop.permute.xlu0 %1200 }
 0x3bd   :  { %1866 = vmatpush3.msra.mxu0 %v863_v16  ;;  %1684 = vst [vmem:[#allocation2 + $0x8] sm:$0xff] %v863_v16 }
 0x3be   :  { %1868 = vmatmul.mubr.msk.f32.vlgmr.msra.gmra.mxu0 %vm83_vm0, %v865_v8  ;;  %1870 = vmatprep.subr.mxu0 %v2131_v2 }
 0x3bf   :  { %1872 = vmatprep.mubr.msk.f32.mxu0 %vm2132_vm1, %v2131_v2 }
 0x3c9   :  { %v1999_v13 = vpop.eup %1998 }
 0x3ca   :  { %v2544_v22 = vmul.f32 0.6931472, %v1999_v13 }
 0x3cc   :  { %v864_v25 = vsel %vm2530_vm13, %v2544_v22, 0.0 }
 0x47e   :  { %v973_v28 = vpop.f32.mrf.mxu0 }
 0x47f   :  { %v974_v31 = vadd.f32 %v973_v28, %v902_v27  ;;  %v1211_v27 = vpop.permute.xlu0 %1210 }
 0x480   :  { %v1869_v23 = vpop.f32.mrf.mxu0 }
 0x481   :  { %vm977_vm14 = vcmp.gt.f32.partialorder %v974_v31, 0.0  ;;  %v978_v5 = vmul.f32 0.2, %v974_v31 }
 0x483   :  { %v979_v33 = vsel %vm977_vm14, %v974_v31, %v978_v5 }
 0x484   :  { %1871 = vmatpush3.msk.msra.mxu0 %vm169_vm3, %v979_v33 }
 0x485   :  { %1873 = vmatmul.mubr.msk.f32.vlgmr.msra.gmra.mxu0 %vm165_vm4, %v866_v30  ;;  %1875 = vmatprep.subr.mxu0 %v2131_v2 }
 0x486   :  { %1877 = vmatprep.mubr.msk.f32.mxu0 %vm2132_vm1, %v2131_v2  ;;  %v878_v2 = vld [vmem:[%s2781_s9 + $0x50] sm:$0xff] }
 0x487   :  { %1897 = vmatprep.mubr.msk.f32.mxu1 %vm165_vm4, %v878_v2 }
 0x545   :  { %v1057_v26 = vpop.f32.mrf.mxu0 }
 0x546   :  { %v1058_v35 = vadd.f32 %v1057_v26, %v983_v34  ;;  %v1216_v34 = vpop.permute.xlu1 %1215 }
 0x547   :  { %v1874_v24 = vpop.f32.mrf.mxu0 }
 0x548   :  { %vm1061_vm15 = vcmp.gt.f32.partialorder %v1058_v35, 0.0  ;;  %v1062_v36 = vmul.f32 0.2, %v1058_v35 }
 0x54a   :  { %v1063_v38 = vsel %vm1061_vm15, %v1058_v35, %v1062_v36 }
 0x54b   :  { %1876 = vmatpush3.msk.msra.mxu0 %vm169_vm3, %v1063_v38 }
 0x54c   :  { %1878 = vmatmul.mubr.msk.f32.vlgmr.msra.gmra.mxu0 %vm165_vm4, %v867_v37 }
 0x54d   :  { %1882 = vmatprep.mubr.msk.f32.mxu0 %vm165_vm4, %v868_v39 }
 0x60c   :  { %v1141_v41 = vpop.f32.mrf.mxu0 }
 0x60d   :  { %v1142_v42 = vadd.f32 %v1141_v41, %v1067_v40 }
 0x60e   :  { %v1879_v32 = vpop.f32.mrf.mxu0 }
 0x60f   :  { %vm1145_vm0 = vcmp.gt.f32.partialorder %v1142_v42, 0.0  ;;  %v1146_v45 = vmul.f32 0.2, %v1142_v42 }
 0x611   :  { %v1147_v46 = vsel %vm1145_vm0, %v1142_v42, %v1146_v45 }
 0x612   :  { %1880 = vmatprep.subr.msk.mxu0 %vm169_vm3, %v1147_v46  ;;  %1903 = vmatprep.subr.msk.mxu1 %vm169_vm3, %v1147_v46 }
 0x613   :  { %1881 = vmatpush3.msk.msra.mxu0 %vm169_vm3, %v1147_v46  ;;  %1904 = vmatpush3.msk.msra.mxu1 %vm169_vm3, %v1147_v46 }
 0x614   :  { %1883 = vmatmul.mubr.msk.f32.vlgmr.msra.gmra.mxu0 %vm165_vm4, %v869_v47  ;;  %1898 = vmatmul.mubr.msk.f32.vlgmr.msra.gmra.mxu1 %vm165_vm4, %v879_v44 }
 0x615   :  { %1885 = vmatprep.mubr.msk.f32.mxu0 %vm165_vm4, %v870_v48  ;;  %1900 = vmatprep.mubr.msk.f32.mxu1 %vm165_vm4, %v880_v49 }
 0x618   :  { %1886 = vmatmul.mubr.msk.f32.gmra.mxu0 %vm165_vm4, %v871_v50  ;;  %1901 = vmatmul.mubr.msk.f32.gmra.mxu1 %vm165_vm4, %v881_v19 }
 0x619   :  { %1888 = vmatprep.mubr.msk.f32.mxu0 %vm165_vm4, %v872_v51 }
 0x61c   :  { %1889 = vmatmul.mubr.msk.f32.gmra.mxu0 %vm165_vm4, %v873_v52 }
 0x61d   :  { %1891 = vmatprep.mubr.msk.f32.mxu0 %vm165_vm4, %v874_v53 }
 0x620   :  { %1892 = vmatmul.mubr.msk.f32.gmra.mxu0 %vm165_vm4, %v875_v54 }
 0x621   :  { %1894 = vmatprep.mubr.msk.f32.mxu0 %vm165_vm4, %v876_v55 }
 0x624   :  { %1895 = vmatmul.mubr.msk.f32.gmra.mxu0 %vm165_vm4, %v877_v56 }
 0x6d4   :  { %v1884_v7 = vpop.f32.mrf.mxu0  ;;  %v1899_v10 = vpop.f32.mrf.mxu1 }
 0x6d5   :  { %v2624_v14 = vadd.f32 %v1899_v10, %v1206_v4  ;;  %v1335_v62 = vadd.f32 %v1884_v7, %v1156_v59 }
 0x6d6   :  { %v1329_v15 = vpop.f32.mrf.mxu0  ;;  %v1379_v17 = vpop.f32.mrf.mxu1 }
 0x6d7   :  { %v1330_v20 = vadd.f32 %v1329_v15, %v1151_v18  ;;  %v1540_v43 = vand.u32 2147483647, %v2624_v14  ;;  %v2627_v16 = vadd.f32 %v1379_v17, %v1201_v11 }
 0x6d8   :  { %v1887_v57 = vpop.f32.mrf.mxu0  ;;  %v1902_v21 = vpop.f32.mrf.mxu1 }
 0x6d9   :  { %v1398_v8 = vmax.f32 %v1330_v20, %v1335_v62  ;;  %v1541_v31 = vsub.f32 0.0, %v1540_v43  ;;  %v1345_v23 = vadd.f32 %v1887_v57, %v1166_v60  ;;  %v1513_v26 = vand.u32 2147483647, %v2627_v16 }
 0x6da   :  { %v1339_v58 = vpop.f32.mrf.mxu0  ;;  %v1389_v6 = vpop.f32.mrf.mxu1  ;;  %v2632_v36 = vadd.f32 %v1902_v21, %v1216_v34 }
 0x6db   :  { %v1340_v13 = vadd.f32 %v1339_v58, %v1161_v61  ;;  %v2629_v30 = vadd.f32 %v1389_v6, %v1211_v27  ;;  %v1542_v38 = vmul.f32 1.442695, %v1541_v31  ;;  %v1514_v41 = vsub.f32 0.0, %v1513_v26 }
 0x6dc   :  { %v1890_v28 = vpop.f32.mrf.mxu0  ;;  %v1608_v46 = vand.u32 2147483647, %v2632_v36 }
 0x6dd   :  { %v1399_v5 = vmax.f32 %v1398_v8, %v1340_v13  ;;  %v1574_v39 = vand.u32 2147483647, %v2629_v30  ;;  %v1355_v47 = vadd.f32 %v1890_v28, %v1176_v63  ;;  %2000 = vpow2.f32 %v1542_v38 }
 0x6de   :  { %v1349_v33 = vpop.f32.mrf.mxu0  ;;  %v1515_v59 = vmul.f32 1.442695, %v1514_v41  ;;  %v1609_v60 = vsub.f32 0.0, %v1608_v46 }
 0x6df   :  { %v1350_v35 = vadd.f32 %v1349_v33, %v1171_v12  ;;  %v1400_v24 = vmax.f32 %v1399_v5, %v1345_v23  ;;  %v1575_v50 = vsub.f32 0.0, %v1574_v39 }
 0x6e0   :  { %v1893_v37 = vpop.f32.mrf.mxu0  ;;  %v1610_v10 = vmul.f32 1.442695, %v1609_v60 }
 0x6e1   :  { %v1401_v2 = vmax.f32 %v1400_v24, %v1350_v35  ;;  %v1365_v54 = vadd.f32 %v1893_v37, %v1186_v0  ;;  %v1576_v63 = vmul.f32 1.442695, %v1575_v50 }
 0x6e2   :  { %v1359_v40 = vpop.f32.mrf.mxu0 }
 0x6e3   :  { %v1402_v42 = vsub.f32 %v1330_v20, %v1401_v2  ;;  %v1405_v32 = vsub.f32 %v1335_v62, %v1401_v2  ;;  %v1408_v45 = vsub.f32 %v1340_v13, %v1401_v2  ;;  %v1411_v44 = vsub.f32 %v1345_v23, %v1401_v2 }
 0x6e4   :  { %v1360_v48 = vadd.f32 %v1359_v40, %v1181_v29  ;;  %v1896_v49 = vpop.f32.mrf.mxu0  ;;  %v1414_v53 = vsub.f32 %v1350_v35, %v1401_v2 }
 0x6e5   :  { %v1403_v19 = vmul.f32 1.442695, %v1402_v42  ;;  %v1406_v51 = vmul.f32 1.442695, %v1405_v32  ;;  %v1409_v52 = vmul.f32 1.442695, %v1408_v45  ;;  %v1375_v4 = vadd.f32 %v1896_v49, %v2622_v1 }
 0x6e6   :  { %v1452_v55 = vmax.f32 %v1355_v47, %v1360_v48  ;;  %v1369_v56 = vpop.f32.mrf.mxu0  ;;  %v1412_v61 = vmul.f32 1.442695, %v1411_v44  ;;  %v1415_v29 = vmul.f32 1.442695, %v1414_v53  ;;  %v1539_v53 = vmax.f32 %v2624_v14, 0.0 }
 0x6e7   :  { %2002 = vpow2.f32 %v1403_v19  ;;  %v1370_v18 = vadd.f32 %v1369_v56, %v1191_v3  ;;  %v1573_v14 = vmax.f32 %v2629_v30, 0.0 }
 0x6e8   :  { %2004 = vpow2.f32 %v1406_v51  ;;  %v1453_v12 = vmax.f32 %v1452_v55, %v1365_v54 }
 0x6e9   :  { %2006 = vpow2.f32 %v1409_v52 }
 0x6ea   :  { %v1454_v7 = vmax.f32 %v1453_v12, %v1370_v18  ;;  %2008 = vpow2.f32 %v1515_v59  ;;  %v2001_v21 = vpop.eup %2000 }
 0x6eb   :  { %2010 = vpow2.f32 %v1412_v61  ;;  %v1544_v31 = vadd.f32 1.0, %v2001_v21 }
 0x6ec   :  { %v1455_v11 = vmax.f32 %v1454_v7, %v1375_v4  ;;  %2012 = vpow2.f32 %v1576_v63 }
 0x6ed   :  { %2014 = vpow2.f32 %v1415_v29  ;;  %v1512_v29 = vmax.f32 %v2627_v16, 0.0 }
 0x6ee   :  { %v1456_v0 = vsub.f32 %v1355_v47, %v1455_v11  ;;  %v1459_v15 = vsub.f32 %v1360_v48, %v1455_v11  ;;  %v1462_v17 = vsub.f32 %v1365_v54, %v1455_v11  ;;  %2016 = vpow2.f32 %v1610_v10 }
 0x6ef   :  { %v1465_v57 = vsub.f32 %v1370_v18, %v1455_v11  ;;  %v1468_v43 = vsub.f32 %v1375_v4, %v1455_v11 }
 0x6f0   :  { %v1457_v3 = vmul.f32 1.442695, %v1456_v0  ;;  %v1460_v20 = vmul.f32 1.442695, %v1459_v15  ;;  %v1463_v62 = vmul.f32 1.442695, %v1462_v17 }
 0x6f1   :  { %v1466_v6 = vmul.f32 1.442695, %v1465_v57  ;;  %v1469_v27 = vmul.f32 1.442695, %v1468_v43  ;;  %v1607_v57 = vmax.f32 %v2632_v36, 0.0 }
 0x6f2   :  { %2018 = vpow2.f32 %v1457_v3 }
 0x6f3   :  { %2020 = vpow2.f32 %v1460_v20 }
 0x6f4   :  { %v2003_v58 = vpop.eup %2002  ;;  %2022 = vpow2.f32 %v1463_v62 }
 0x6f5   :  { %v2005_v1 = vpop.eup %2004  ;;  %2024 = vpow2.f32 %v1466_v6 }
 0x6f6   :  { %v1417_v8 = vadd.f32 %v2005_v1, %v2003_v58  ;;  %v2007_v13 = vpop.eup %2006  ;;  %2026 = vpow2.f32 %v1469_v27 }
 0x6f7   :  { %v2009_v28 = vpop.eup %2008  ;;  %2028 = vlog2.f32 %v1544_v31 }
 0x6f8   :  { %v1418_v23 = vadd.f32 %v2007_v13, %v1417_v8  ;;  %v2011_v5 = vpop.eup %2010  ;;  %v1517_v35 = vadd.f32 1.0, %v2009_v28 }
 0x6f9   :  { %v2013_v33 = vpop.eup %2012 }
 0x6fa   :  { %v1419_v34 = vadd.f32 %v2011_v5, %v1418_v23  ;;  %v2015_v26 = vpop.eup %2014  ;;  %v1578_v38 = vadd.f32 1.0, %v2013_v33 }
 0x6fb   :  { %v2017_v37 = vpop.eup %2016 }
 0x6fc   :  { %v1420_v24 = vadd.f32 %v2015_v26, %v1419_v34  ;;  %v1612_v2 = vadd.f32 1.0, %v2017_v37 }
 0x6fe   :  { %2030 = vrcp.f32 %v1420_v24 }
 0x6ff   :  { %2032 = vlog2.f32 %v1517_v35  ;;  %v2019_v39 = vpop.eup %2018 }
 0x700   :  { %2034 = vlog2.f32 %v1578_v38  ;;  %v2021_v40 = vpop.eup %2020 }
 0x701   :  { %v1471_v41 = vadd.f32 %v2021_v40, %v2019_v39  ;;  %v2023_v42 = vpop.eup %2022  ;;  %2036 = vlog2.f32 %v1612_v2 }
 0x702   :  { %v2025_v45 = vpop.eup %2024 }
 0x703   :  { %v1472_v32 = vadd.f32 %v2023_v42, %v1471_v41  ;;  %v2027_v47 = vpop.eup %2026 }
 0x704   :  { %v2029_v44 = vpop.eup %2028 }
 0x705   :  { %v1473_v46 = vadd.f32 %v2025_v45, %v1472_v32  ;;  %v1546_v19 = vmul.f32 0.6931472, %v2029_v44 }
 0x707   :  { %v1474_v48 = vadd.f32 %v2027_v47, %v1473_v46  ;;  %v2638_v60 = vadd.f32 %v1546_v19, %v1539_v53 }
 0x709   :  { %2038 = vrcp.f32 %v1474_v48  ;;  %v1549_v15 = vand.u32 2147483647, %v2638_v60 }
 0x70b   :  { %v2031_v49 = vpop.eup %2030  ;;  %v1550_v62 = vsub.f32 0.0, %v1549_v15 }
 0x70c   :  { %v2033_v50 = vpop.eup %2032  ;;  %v1422_v51 = vmul.f32 8.0, %v2031_v49 }
 0x70d   :  { %v2035_v52 = vpop.eup %2034  ;;  %v1519_v59 = vmul.f32 0.6931472, %v2033_v50  ;;  %v1551_v27 = vmul.f32 1.442695, %v1550_v62 }
 0x70e   :  { %v1423_v54 = vmul.f32 %v2003_v58, %v1422_v51  ;;  %v1424_v55 = vmul.f32 %v2005_v1, %v1422_v51  ;;  %v1425_v56 = vmul.f32 %v2007_v13, %v1422_v51  ;;  %v1426_v18 = vmul.f32 %v2011_v5, %v1422_v51  ;;  %v2037_v63 = vpop.eup %2036 }
 0x70f   :  { %v1580_v4 = vmul.f32 0.6931472, %v2035_v52  ;;  %v1427_v7 = vmul.f32 %v2015_v26, %v1422_v51  ;;  %v2641_v11 = vadd.f32 %v1519_v59, %v1512_v29  ;;  %v1614_v17 = vmul.f32 0.6931472, %v2037_v63 }
 0x710   :  { %v1428_v61 = vmul.f32 1.442695, %v1423_v54  ;;  %v1430_v12 = vmul.f32 1.442695, %v1424_v55  ;;  %v1432_v10 = vmul.f32 1.442695, %v1425_v56 }
 0x711   :  { %v1434_v0 = vmul.f32 1.442695, %v1426_v18  ;;  %v2645_v3 = vadd.f32 %v1580_v4, %v1573_v14  ;;  %v1436_v20 = vmul.f32 1.442695, %v1427_v7  ;;  %v1522_v16 = vand.u32 2147483647, %v2641_v11 }
 0x712   :  { %2040 = vpow2.f32 %v1428_v61  ;;  %v2649_v43 = vadd.f32 %v1614_v17, %v1607_v57 }
 0x713   :  { %2042 = vpow2.f32 %v1430_v12  ;;  %v1583_v30 = vand.u32 2147483647, %v2645_v3  ;;  %v1523_v1 = vsub.f32 0.0, %v1522_v16 }
 0x714   :  { %2044 = vpow2.f32 %v1432_v10  ;;  %v1617_v28 = vand.u32 2147483647, %v2649_v43 }
 0x715   :  { %2046 = vpow2.f32 %v1434_v0  ;;  %v1584_v36 = vsub.f32 0.0, %v1583_v30  ;;  %v1524_v35 = vmul.f32 1.442695, %v1523_v1 }
 0x716   :  { %v2039_v21 = vpop.eup %2038  ;;  %2048 = vpow2.f32 %v1436_v20  ;;  %v1618_v37 = vsub.f32 0.0, %v1617_v28 }
 0x717   :  { %v1476_v58 = vmul.f32 8.0, %v2039_v21 }
 0x719   :  { %v1477_v6 = vmul.f32 %v2019_v39, %v1476_v58  ;;  %v1478_v8 = vmul.f32 %v2021_v40, %v1476_v58  ;;  %v1479_v13 = vmul.f32 %v2023_v42, %v1476_v58  ;;  %v1480_v31 = vmul.f32 %v2025_v45, %v1476_v58 }
 0x71a   :  { %v1481_v33 = vmul.f32 %v2027_v47, %v1476_v58  ;;  %v1585_v39 = vmul.f32 1.442695, %v1584_v36  ;;  %v1619_v45 = vmul.f32 1.442695, %v1618_v37  ;;  %v1548_v37 = vmax.f32 %v2638_v60, 0.0 }
 0x71b   :  { %v1482_v23 = vmul.f32 1.442695, %v1477_v6  ;;  %v1484_v5 = vmul.f32 1.442695, %v1478_v8  ;;  %v1486_v34 = vmul.f32 1.442695, %v1479_v13 }
 0x71c   :  { %v1488_v38 = vmul.f32 1.442695, %v1480_v31  ;;  %v1490_v41 = vmul.f32 1.442695, %v1481_v33  ;;  %v2658_v6 = vld [vmem:[%s2772_s0] sm:$0xff]  ;;  %s2134_s0 = smov [#allocation2]  }
 0x71d   :  { %2050 = vpow2.f32 %v1482_v23  ;;  %v2661_v8 = vclamps-f32 %v2658_v6, 4.0  ;;  %vm1678_vm5 = vcmp.ge.f32.partialorder %v2658_v6, -4.0  ;;  %vm1679_vm6 = vcmp.le.f32.partialorder %v2658_v6, 4.0  ;;  %s1702_s27 = sshll.u32 %s2134_s0, 4  ;;  %s1703_s27 = int_to_ptr.vmem [resolvable:$true] %s1702_s27 }
 0x71e   :  { %2052 = vpow2.f32 %v1484_v5  ;;  %vm2753_vm7 = vmand %vm1678_vm5, %vm1679_vm6  ;;  %s2087_s1 = scalar_lea.vmem %s1703_s27, 256  ;;  %p2092_p1 = scmp.lt.s32.totalorder %s1703_s27, %s1703_s27 }
 0x71f   :  { %v2041_v26 = vpop.eup %2040  ;;  %2054 = vpow2.f32 %v1551_v27  ;;  %p2088_p0 = scmp.ne.s32.totalorder %s1703_s27, %s2087_s1  ;;  %p2093_p2 = scmp.lt.s32.totalorder %s2087_s1, %s2087_s1 }
 0x720   :  { %v2043_v24 = vpop.eup %2042  ;;  %2056 = vpow2.f32 %v1486_v34 }
 0x721   :  { %v1438_v2 = vadd.f32 %v2043_v24, %v2041_v26  ;;  %v2045_v40 = vpop.eup %2044  ;;  %2058 = vpow2.f32 %v1524_v35  ;;  %p2094_p3 = por %p2093_p2, %p2092_p1 }
 0x722   :  { %v2047_v32 = vpop.eup %2046  ;;  %2060 = vpow2.f32 %v1488_v38 }
 0x723   :  { %v1439_v42 = vadd.f32 %v2045_v40, %v1438_v2  ;;  %2062 = vpow2.f32 %v1585_v39  ;;  %v2049_v47 = vpop.eup %2048  ;;  %p2095_p4 = pnand %p2094_p3, %p2088_p0 }
 0x724   :  { %2064 = vpow2.f32 %v1490_v41  ;;  %v1521_v41 = vmax.f32 %v2641_v11, 0.0 }
 0x725   :  { %v1440_v46 = vadd.f32 %v2047_v32, %v1439_v42  ;;  %2066 = vpow2.f32 %v1619_v45 }
 0x727   :  { %v1441_v44 = vadd.f32 %v2049_v47, %v1440_v46 }
 0x729   :  { %2068 = vrcp.f32 %v1441_v44 }
 0x72a   :  { %v2051_v48 = vpop.eup %2050 }
 0x72b   :  { %v2053_v49 = vpop.eup %2052 }
 0x72c   :  { %v2055_v50 = vpop.eup %2054  ;;  %v1492_v19 = vadd.f32 %v2053_v49, %v2051_v48 }
 0x72d   :  { %v2057_v51 = vpop.eup %2056  ;;  %v1553_v55 = vadd.f32 1.0, %v2055_v50  ;;  %v1582_v50 = vmax.f32 %v2645_v3, 0.0 }
 0x72e   :  { %v2059_v52 = vpop.eup %2058  ;;  %v1493_v53 = vadd.f32 %v2057_v51, %v1492_v19 }
 0x72f   :  { %v2061_v54 = vpop.eup %2060  ;;  %v1526_v61 = vadd.f32 1.0, %v2059_v52  ;;  %2070 = vlog2.f32 %v1553_v55 }
 0x730   :  { %v2063_v56 = vpop.eup %2062  ;;  %v1494_v59 = vadd.f32 %v2061_v54, %v1493_v53 }
 0x731   :  { %v2065_v18 = vpop.eup %2064  ;;  %v1587_v29 = vadd.f32 1.0, %v2063_v56 }
 0x732   :  { %v1495_v12 = vadd.f32 %v2065_v18, %v1494_v59  ;;  %v2067_v63 = vpop.eup %2066 }
 0x733   :  { %v1621_v10 = vadd.f32 1.0, %v2067_v63 }
 0x734   :  { %2072 = vrcp.f32 %v1495_v12 }
 0x735   :  { %2074 = vlog2.f32 %v1526_v61 }
 0x736   :  { %v2069_v4 = vpop.eup %2068  ;;  %2076 = vlog2.f32 %v1587_v29 }
 0x737   :  { %v1443_v7 = vmul.f32 0.995, %v2069_v4  ;;  %2078 = vlog2.f32 %v1621_v10 }
 0x739   :  { %v1444_v14 = vmul.f32 %v2041_v26, %v1443_v7  ;;  %v1446_v0 = vmul.f32 %v2043_v24, %v1443_v7  ;;  %v1448_v15 = vmul.f32 %v2045_v40, %v1443_v7  ;;  %v1450_v57 = vmul.f32 %v2047_v32, %v1443_v7 }
 0x73b   :  { %v1445_v17 = vadd.f32 0.001, %v1444_v14  ;;  %v1447_v20 = vadd.f32 0.001, %v1446_v0  ;;  %v1449_v16 = vadd.f32 0.001, %v1448_v15 }
 0x73c   :  { %v1451_v13 = vadd.f32 0.001, %v1450_v57  ;;  %v2071_v31 = vpop.eup %2070 }
 0x73d   :  { %v1508_v21 = vmul.f32 8.0, %v1445_v17  ;;  %v1533_v62 = vadd.f32 %v1447_v20, %v1445_v17  ;;  %v1555_v46 = vmul.f32 0.6931472, %v2071_v31 }
 0x73f   :  { %v2653_v30 = vadd.f32 -4.0, %v1508_v21  ;;  %v1535_v58 = vmul.f32 8.0, %v1533_v62  ;;  %v1567_v1 = vadd.f32 %v1533_v62, %v1449_v16  ;;  %v1556_v3 = vadd.f32 %v1555_v46, %v1548_v37 }
 0x740   :  { %v1616_v62 = vmax.f32 %v2649_v43, 0.0 }
 0x741   :  { %v1779_v27 = vadd.f32 -4.0, %v1535_v58  ;;  %v1569_v28 = vmul.f32 8.0, %v1567_v1  ;;  %v1601_v36 = vadd.f32 %v1567_v1, %v1451_v13  ;;  %v2073_v23 = vpop.eup %2072  ;;  %v1531_v5 = vadd.f32 4.0, %v2653_v30 }
 0x742   :  { %v2075_v26 = vpop.eup %2074  ;;  %v1497_v35 = vmul.f32 0.995, %v2073_v23  ;;  %vm2669_vm1 = vcmp.ge.f32.partialorder %v2661_v8, %v2653_v30  ;;  %v1557_v16 = vadd.f32 0.001, %v1556_v3 }
 0x743   :  { %v1562_v33 = vsub.f32 %v1779_v27, %v2653_v30  ;;  %v2665_v34 = vadd.f32 -4.0, %v1569_v28  ;;  %v1603_v2 = vmul.f32 8.0, %v1601_v36  ;;  %v2077_v40 = vpop.eup %2076  ;;  %v1528_v47 = vmul.f32 0.6931472, %v2075_v26 }
 0x744   :  { %v1498_v42 = vmul.f32 %v2051_v48, %v1497_v35  ;;  %v1500_v32 = vmul.f32 %v2053_v49, %v1497_v35  ;;  %v1502_v45 = vmul.f32 %v2057_v51, %v1497_v35  ;;  %vm2679_vm2 = vcmp.ge.f32.partialorder %v2661_v8, %v1779_v27  ;;  %v2079_v51 = vpop.eup %2078 }
 0x745   :  { %v1563_v38 = vsel %vm2669_vm1, %v1562_v33, %v1531_v5  ;;  %v1596_v39 = vsub.f32 %v2665_v34, %v1779_v27  ;;  %v1783_v60 = vadd.f32 -4.0, %v1603_v2  ;;  %v1589_v55 = vmul.f32 0.6931472, %v2077_v40 }
 0x746   :  { %v1499_v19 = vadd.f32 0.001, %v1498_v42  ;;  %v1501_v52 = vadd.f32 0.001, %v1500_v32  ;;  %v1504_v11 = vmul.f32 %v2061_v54, %v1497_v35  ;;  %v1503_v56 = vadd.f32 0.001, %v1502_v45 }
 0x747   :  { %v1597_v53 = vsel %vm2679_vm2, %v1596_v39, %v1563_v38  ;;  %v1630_v48 = vsub.f32 %v1783_v60, %v2665_v34  ;;  %v1639_v49 = vsub.f32 4.0, %v1783_v60  ;;  %vm2689_vm3 = vcmp.ge.f32.partialorder %v2661_v8, %v2665_v34 }
 0x748   :  { %v1510_v59 = vmul.f32 8.0, %v1499_v19  ;;  %v1534_v18 = vadd.f32 %v1501_v52, %v1499_v19  ;;  %v1529_v12 = vadd.f32 %v1528_v47, %v1521_v41  ;;  %vm2696_vm4 = vcmp.ge.f32.partialorder %v2661_v8, %v1783_v60 }
 0x749   :  { %v1631_v63 = vsel %vm2689_vm3, %v1630_v48, %v1597_v53  ;;  %v1623_v14 = vmul.f32 0.6931472, %v2079_v51  ;;  %v1505_v0 = vadd.f32 0.001, %v1504_v11  ;;  %v1559_v15 = vsel %vm2669_vm1, %v2653_v30, -4.0 }
 0x74a   :  { %v2700_v29 = vadd.f32 -4.0, %v1510_v59  ;;  %v1537_v4 = vmul.f32 8.0, %v1534_v18  ;;  %v1568_v7 = vadd.f32 %v1534_v18, %v1503_v56  ;;  %v1640_v10 = vsel %vm2696_vm4, %v1639_v49, %v1631_v63 }
 0x74b   :  { %2080 = vrcp.f32 %v1640_v10  ;;  %v1590_v17 = vadd.f32 %v1589_v55, %v1582_v50  ;;  %v1530_v21 = vadd.f32 0.001, %v1529_v12  ;;  %v1593_v31 = vsel %vm2679_vm2, %v1779_v27, %v1559_v15 }
 0x74c   :  { %v1780_v20 = vadd.f32 -4.0, %v1537_v4  ;;  %v1571_v57 = vmul.f32 8.0, %v1568_v7  ;;  %v1602_v58 = vadd.f32 %v1568_v7, %v1505_v0  ;;  %v1532_v1 = vadd.f32 4.0, %v2700_v29 }
 0x74d   :  { %v1624_v36 = vadd.f32 %v1623_v14, %v1616_v62  ;;  %v1561_v30 = vsel %vm2669_vm1, %v1530_v21, 1.0  ;;  %v1566_v23 = vsel %vm2669_vm1, %v1557_v16, %v1530_v21  ;;  %v1591_v33 = vadd.f32 0.001, %v1590_v17 }
 0x74e   :  { %v1564_v13 = vsub.f32 %v1780_v20, %v2700_v29  ;;  %v1782_v28 = vadd.f32 -4.0, %v1571_v57  ;;  %v1605_v5 = vmul.f32 8.0, %v1602_v58  ;;  %v1627_v37 = vsel %vm2689_vm3, %v2665_v34, %v1593_v31 }
 0x74f   :  { %v1595_v27 = vsel %vm2679_vm2, %v1557_v16, %v1561_v30  ;;  %v1600_v39 = vsel %vm2679_vm2, %v1591_v33, %v1566_v23  ;;  %v1625_v2 = vadd.f32 0.001, %v1624_v36  ;;  %v1636_v41 = vsel %vm2696_vm4, %v1783_v60, %v1627_v37 }
 0x750   :  { %v1565_v43 = vsel %vm2669_vm1, %v1564_v13, %v1532_v1  ;;  %v1598_v26 = vsub.f32 %v1782_v28, %v1780_v20  ;;  %v1784_v35 = vadd.f32 -4.0, %v1605_v5  ;;  %v1629_v32 = vsel %vm2689_vm3, %v1591_v33, %v1595_v27 }
 0x751   :  { %v1634_v45 = vsel %vm2689_vm3, %v1625_v2, %v1600_v39  ;;  %v1647_v46 = vsub.f32 %v2661_v8, %v1636_v41  ;;  %v1638_v50 = vsel %vm2696_vm4, %v1625_v2, %v1629_v32  ;;  %v1560_v7 = vsel %vm2669_vm1, %v2700_v29, -4.0 }
 0x752   :  { %v1599_v38 = vsel %vm2679_vm2, %v1598_v26, %v1565_v43  ;;  %v1632_v40 = vsub.f32 %v1784_v35, %v1782_v28  ;;  %v1641_v42 = vsub.f32 4.0, %v1784_v35  ;;  %v1643_v60 = vsel %vm2696_vm4, 1.0, %v1634_v45 }
 0x753   :  { %v1656_v11 = vadd.f32 %v1643_v60, %v1638_v50  ;;  %v1594_v17 = vsel %vm2679_vm2, %v1780_v20, %v1560_v7 }
 0x754   :  { %v1633_v34 = vsel %vm2689_vm3, %v1632_v40, %v1599_v38  ;;  %v1628_v16 = vsel %vm2689_vm3, %v1782_v28, %v1594_v17 }
 0x755   :  { %v1642_v19 = vsel %vm2696_vm4, %v1641_v42, %v1633_v34  ;;  %v1637_v44 = vsel %vm2696_vm4, %v1784_v35, %v1628_v16 }
 0x758   :  { %v2081_v47 = vpop.eup %2080 }
 0x759   :  { %v1646_v52 = vmul.f32 %v2081_v47, %v1642_v19  ;;  %v1648_v53 = vmul.f32 %v2081_v47, %v1647_v46 }
 0x75b   :  { %v1649_v55 = vsub.f32 1.0, %v1648_v53  ;;  %v1657_v48 = vmul.f32 2.0, %v1646_v52  ;;  %v1666_v8 = vmul.f32 %v1648_v53, %v1643_v60  ;;  %v1651_v18 = vmul.f32 %v1648_v53, %v1646_v52 }
 0x75c   :  { %v1665_v62 = vmul.f32 %v1646_v52, %v1646_v52 }
 0x75d   :  { %v1650_v49 = vmul.f32 %v1649_v55, %v1648_v53  ;;  %v1658_v51 = vsub.f32 %v1656_v11, %v1657_v48  ;;  %v1667_v63 = vmul.f32 %v1666_v8, %v1648_v53  ;;  %v1670_v4 = vmul.f32 %v1649_v55, %v1638_v50 }
 0x75e   :  { %v1652_v10 = vmul.f32 %v1651_v18, %v1648_v53 }
 0x75f   :  { %v1659_v56 = vmul.f32 %v1658_v51, %v1650_v49  ;;  %v1668_v3 = vmul.f32 %v1657_v48, %v1650_v49  ;;  %v1653_v12 = vmul.f32 %v1650_v49, %v1638_v50  ;;  %v1671_v15 = vmul.f32 %v1670_v4, %v1649_v55 }
 0x761   :  { %v1660_v59 = vadd.f32 %v1659_v56, %v1646_v52  ;;  %v1669_v14 = vadd.f32 %v1668_v3, %v1667_v63  ;;  %v1654_v0 = vadd.f32 %v1653_v12, %v1652_v10 }
 0x763   :  { %2082 = vrcp.f32 %v1660_v59  ;;  %v1672_v57 = vadd.f32 %v1671_v15, %v1669_v14  ;;  %v1655_v21 = vmul.f32 %v1654_v0, %v1642_v19 }
 0x765   :  { %v1673_v29 = vmul.f32 %v1672_v57, %v1665_v62 }
 0x770   :  { %v2083_v58 = vpop.eup %2082 }
 0x771   :  { %v1663_v24 = vmul.f32 %v2083_v58, %v1655_v21  ;;  %v1674_v1 = vmul.f32 %v2083_v58, %v2083_v58 }
 0x773   :  { %v1664_v13 = vadd.f32 %v1663_v24, %v1637_v44  ;;  %v1675_v61 = vmul.f32 %v1674_v1, %v1673_v29 }
 0x775   :  { %2084 = vlog2.f32 %v1675_v61  ;;  %v1681_v28 = vsel %vm2753_vm7, %v1664_v13, %v2658_v6 }
 0x776   :  { %1683 = vst [vmem:[#allocation2] sm:$0xff] %v1681_v28 }
 0x777   :  { %2098 = shalt.err (!%p2095_p4)
}
 0x778   :  { %s2135_s8 = smov 128   ;;  %s2136_s2 = smov 8   ;;  %v1686_v54 = vlaneseq }
 0x779   :  { %1708 = dma.vmem_to_hbm [thread:$0]  %s1703_s27, 256, %s2783_s11, [#allocation3], %s2135_s8, %s2135_s8, %s2136_s2  }
 0x77a   :  { %v1687_v31 = vshrl.u32 %v1686_v54, 7  ;;  %s2137_s30 = smov [#allocation4]  }
 0x77b   :  { %s1715_s11 = sshll.u32 %s2137_s30, 4  ;;  %s1716_s11 = int_to_ptr.vmem [resolvable:$true] %s1715_s11 }
 0x77c   :  { %vm1688_vm8 = vcmp.lt.s32.totalorder %v1687_v31, 4  ;;  %s2107_s13 = scalar_lea.vmem %s1716_s11, 16  ;;  %s2111_s14 = scalar_lea.vmem %s1716_s11, 32 }
 0x77d   :  { %p2108_p5 = scmp.ne.s32.totalorder %s1716_s11, %s2107_s13  ;;  %p2112_p6 = scmp.lt.s32.totalorder %s1716_s11, %s1716_s11 }
 0x77e   :  { %p2113_p7 = scmp.lt.s32.totalorder %s2111_s14, %s2107_s13 }
 0x780   :  { %p2114_p8 = por %p2113_p7, %p2112_p6 }
 0x782   :  { %v2085_v36 = vpop.eup %2084  ;;  %p2115_p9 = pnand %p2114_p8, %p2108_p5 }
 0x783   :  { %v1677_v30 = vmul.f32 0.6931472, %v2085_v36 }
 0x785   :  { %v1682_v6 = vsel %vm2753_vm7, %v1677_v30, 0.0 }
 0x786   :  { %v1685_v23 = vadd.f32 %v1682_v6, %v864_v25 }
 0x788   :  { %v1689_v5 = vsel %vm1688_vm8, %v1685_v23, 0.0 }
 0x789   :  { %v1690_v33 = vrot.slane %v1689_v5, 4 }
 0x78b   :  { %v1691_v43 = vadd.f32 %v1690_v33, %v1689_v5 }
 0x78d   :  { %v1692_v26 = vrot.slane %v1691_v43, 2 }
 0x78f   :  { %v1693_v35 = vadd.f32 %v1692_v26, %v1691_v43 }
 0x791   :  { %v1694_v37 = vrot.slane %v1693_v35, 1 }
 0x793   :  { %v1695_v27 = vadd.f32 %v1694_v37, %v1693_v35 }
 0x795   :  { %1696 = vst [vmem:[#allocation4] sm:$0x1] %v1695_v27 }
 0x796   :  { %2118 = shalt.err (!%p2115_p9)
}
 0x797   :  { %1718 = dma.vmem_to_hbm [thread:$0]  %s1716_s11, 16, %s2784_s12, [#allocation5]  }
 0x798   :  { %2127 = dma.done.wait [#allocation3], 256  }
 0x799   :  { %2128 = vsyncadd [#allocation3], 4294967040 }
 0x79a   :  { %2129 = dma.done.wait [#allocation5], 16  }
 0x79b   :  { %2130 = vsyncadd [#allocation5], 4294967280 }
 0x79c   :  { %1725 = vsyncpa [#allocation3], 1 }
 0x79d   :  { %1726 = vsyncpa [#allocation5], 1 }

</bundles_post_ra>
